<compile_context>
chip_gen: v7x
topology: tpu7x:2x2x1
jax: 0.10.0
libtpu: 0.0.40
codegen_flags: <defaults>
</compile_context>

<pallas_src>
import functools
import math

import jax
import jax.numpy as jnp
from jax import lax
from jax.experimental import pallas as pl
from jax.experimental.pallas import tpu as pltpu


def _mha_ln_kernel(x_ref, wqkv_ref, bqkv_ref, wo_ref, bo_ref, gamma_ref, beta_ref,
                   o_ref, *, num_heads, head_dim, eps, approx_recip):
    """One batch row per grid step: fused QKV -> per-head attention -> out-proj -> +x -> LN.

    Block shapes:
      x_ref    : (1, S, E)   f32
      wqkv_ref : (E, 3E)     bf16/f32  packed [Wq*scale | Wk | Wv] (x @ W form), VMEM-resident
      bqkv_ref : (1, 3E)     f32       packed [bq*scale | bk | bv]
      wo_ref   : (H, hd, E)  bf16/f32  per-head rows of Wo^T, VMEM-resident
      bo_ref, gamma_ref, beta_ref : (1, E) f32
      o_ref    : (1, S, E)
    """
    S = x_ref.shape[1]
    E = x_ref.shape[2]
    mx_dtype = wqkv_ref.dtype

    x = x_ref[0]                                   # (S, E) f32
    x_mx = x.astype(mx_dtype)                      # cast ONCE per batch (not per head)

    # Full-width fused QKV projection: N = 3E lanes, x goes through the MXU once.
    qkv = jnp.dot(x_mx, wqkv_ref[...],
                  preferred_element_type=jnp.float32) + bqkv_ref[...]   # (S, 3E) f32

    q = qkv[:, :E]                                 # E-boundary slices (aligned when E % 128 == 0)
    k = qkv[:, E:2 * E]
    v = qkv[:, 2 * E:]

    # Out-projection accumulator carried as a value (vregs / compiler-managed), written once.
    attn = jnp.zeros((S, E), jnp.float32)

    for h in range(num_heads):                     # static unroll; H is small
        lo = h * head_dim
        hi = lo + head_dim
        qh = q[:, lo:hi].astype(mx_dtype)          # (S, hd)
        kh = k[:, lo:hi].astype(mx_dtype)
        vh = v[:, lo:hi].astype(mx_dtype)

        # Contraction over the last dim of both operands (no explicit k transpose needed).
        s = jnp.einsum('qd,kd->qk', qh, kh,
                       preferred_element_type=jnp.float32)              # (S, S) f32
        s = s - jnp.max(s, axis=-1, keepdims=True)
        p = jnp.exp(s)
        denom = jnp.sum(p, axis=-1, keepdims=True)
        if approx_recip:
            p = p * pl.reciprocal(denom, approx=True)    # EUP, fast path only
        else:
            p = p / denom                                # exact, used by the f32 check path

        ctx = jnp.dot(p.astype(mx_dtype), vh,
                      preferred_element_type=jnp.float32)               # (S, hd)
        # Output projection decomposes over heads: attn_out = sum_h ctx_h @ Wo_h.
        attn = attn + jnp.dot(ctx.astype(mx_dtype), wo_ref[h],
                              preferred_element_type=jnp.float32)       # (S, E)

    # Residual + LayerNorm (all f32), single dense store of the output block.
    y = x + attn + bo_ref[...]
    mean = jnp.mean(y, axis=-1, keepdims=True)
    var = jnp.mean(jnp.square(y - mean), axis=-1, keepdims=True)
    y = (y - mean) * lax.rsqrt(var + eps)
    o_ref[0] = (y * gamma_ref[...] + beta_ref[...]).astype(o_ref.dtype)


def prepare_params(params, *, num_heads, mxu_dtype=jnp.bfloat16):
    """One-time parameter prep (hoisted out of the per-call path).

    Converts PyTorch-convention in_proj / out_proj parameters into x @ W form, folds the
    1/sqrt(head_dim) scale into the Q weights/bias, packs [Wq|Wk|Wv] into one (E, 3E)
    matrix for a single full-width projection, and casts MXU operands to `mxu_dtype`.
    (On v7x the weights could additionally be fp8-quantized here; int8 on v5e/v6e.)
    """
    in_w = jnp.asarray(params["in_proj_weight"], jnp.float32)    # (3E, E)
    in_b = jnp.asarray(params["in_proj_bias"], jnp.float32)      # (3E,)
    wo = jnp.asarray(params["out_proj_weight"], jnp.float32)     # (E, E)
    bo = jnp.asarray(params["out_proj_bias"], jnp.float32)       # (E,)
    E = wo.shape[0]
    H = num_heads
    hd = E // H
    scale = 1.0 / math.sqrt(hd)

    w_qkv = in_w.T                                               # (E, 3E), cols = [Q | K | V]
    w_qkv = jnp.concatenate([w_qkv[:, :E] * scale, w_qkv[:, E:]], axis=1)
    b_qkv = jnp.concatenate([in_b[:E] * scale, in_b[E:]]).reshape(1, 3 * E)

    w_o_h = wo.T.reshape(H, hd, E)                               # per-head rows of Wo^T

    return {
        "w_qkv": w_qkv.astype(mxu_dtype),
        "b_qkv": b_qkv.astype(jnp.float32),
        "w_o_h": w_o_h.astype(mxu_dtype),
        "b_o": bo.reshape(1, E).astype(jnp.float32),
        "gamma": jnp.asarray(params["ln_weight"], jnp.float32).reshape(1, E),
        "beta": jnp.asarray(params["ln_bias"], jnp.float32).reshape(1, E),
        "num_heads": H,
        "head_dim": hd,
    }


def self_attention_layer(x, prep, *, eps=1e-5, approx_recip=True,
                         vmem_limit_bytes=32 * 1024 * 1024):
    """x: (B, S, E) float32.  prep: output of prepare_params."""
    B, S, E = x.shape
    H = prep["num_heads"]
    hd = prep["head_dim"]

    kernel = functools.partial(_mha_ln_kernel, num_heads=H, head_dim=hd,
                               eps=eps, approx_recip=approx_recip)

    grid_spec = pltpu.PrefetchScalarGridSpec(
        num_scalar_prefetch=0,
        grid=(B,),                                               # one step per batch row
        in_specs=[
            pl.BlockSpec((1, S, E), lambda b: (b, 0, 0)),        # x
            pl.BlockSpec((E, 3 * E), lambda b: (0, 0)),          # fused QKV weight (resident)
            pl.BlockSpec((1, 3 * E), lambda b: (0, 0)),          # fused QKV bias
            pl.BlockSpec((H, hd, E), lambda b: (0, 0, 0)),       # per-head out-proj rows (resident)
            pl.BlockSpec((1, E), lambda b: (0, 0)),              # out-proj bias
            pl.BlockSpec((1, E), lambda b: (0, 0)),              # LN gamma
            pl.BlockSpec((1, E), lambda b: (0, 0)),              # LN beta
        ],
        out_specs=pl.BlockSpec((1, S, E), lambda b: (b, 0, 0)),
    )

    return pl.pallas_call(
        kernel,
        out_shape=jax.ShapeDtypeStruct((B, S, E), x.dtype),
        grid_spec=grid_spec,
        compiler_params=pltpu.CompilerParams(
            dimension_semantics=("parallel",),                   # batch sharded across TCs (v7x)
            vmem_limit_bytes=vmem_limit_bytes),
    )(x, prep["w_qkv"], prep["b_qkv"], prep["w_o_h"],
      prep["b_o"], prep["gamma"], prep["beta"])


def reference(x, params, *, num_heads, eps=1e-5):
    """Pure-JAX f32 reference mirroring nn.MultiheadAttention(batch_first=True) + LayerNorm."""
    B, S, E = x.shape
    hd = E // num_heads
    in_w, in_b = params["in_proj_weight"], params["in_proj_bias"]
    qkv = jnp.einsum('bse,fe->bsf', x, in_w) + in_b                      # (B, S, 3E)
    q, k, v = jnp.split(qkv, 3, axis=-1)

    def split_heads(t):                                                  # (B, H, S, hd)
        return t.reshape(B, S, num_heads, hd).transpose(0, 2, 1, 3)

    qh, kh, vh = split_heads(q), split_heads(k), split_heads(v)
    s = jnp.einsum('bhqd,bhkd->bhqk', qh, kh) / math.sqrt(hd)
    p = jax.nn.softmax(s, axis=-1)
    ctx = jnp.einsum('bhqk,bhkd->bhqd', p, vh).transpose(0, 2, 1, 3).reshape(B, S, E)
    attn_out = jnp.einsum('bse,fe->bsf', ctx, params["out_proj_weight"]) + params["out_proj_bias"]
    y = x + attn_out
    mean = jnp.mean(y, axis=-1, keepdims=True)
    var = jnp.mean(jnp.square(y - mean), axis=-1, keepdims=True)
    return (y - mean) * lax.rsqrt(var + eps) * params["ln_weight"] + params["ln_bias"]


if __name__ == "__main__":
    B, S, E, H = 2, 8, 32, 8          # batch, seq, hidden_size, num_heads (module default H=8)
    key = jax.random.PRNGKey(0)
    k_x, k_iw, k_ib, k_ow, k_ob, k_g, k_b = jax.random.split(key, 7)

    params = {
        "in_proj_weight": jax.random.normal(k_iw, (3 * E, E), jnp.float32) / math.sqrt(E),
        "in_proj_bias":   jax.random.normal(k_ib, (3 * E,), jnp.float32) * 0.02,
        "out_proj_weight": jax.random.normal(k_ow, (E, E), jnp.float32) / math.sqrt(E),
        "out_proj_bias":   jax.random.normal(k_ob, (E,), jnp.float32) * 0.02,
        "ln_weight": jnp.ones((E,), jnp.float32) + 0.1 * jax.random.normal(k_g, (E,), jnp.float32),
        "ln_bias":   0.1 * jax.random.normal(k_b, (E,), jnp.float32),
    }
    x = jax.random.normal(k_x, (B, S, E), jnp.float32)

    # One-time parameter prep (transposes / packing / scaling / casts hoisted here).
    prep_bf16 = prepare_params(params, num_heads=H)                         # bf16 MXU fast path
    prep_f32 = prepare_params(params, num_heads=H, mxu_dtype=jnp.float32)   # precision-check path

    out_bf16 = jax.block_until_ready(self_attention_layer(x, prep_bf16, approx_recip=True))
    out_f32 = jax.block_until_ready(self_attention_layer(x, prep_f32, approx_recip=False))

    ref = reference(x, params, num_heads=H)
    err_f32 = float(jnp.max(jnp.abs(out_f32 - ref)))
    err_bf16 = float(jnp.max(jnp.abs(out_bf16 - ref)))

    assert out_bf16.shape == (B, S, E)
    assert err_f32 < 1e-2, f"f32-path mismatch vs reference, max err {err_f32}"
    assert err_bf16 < 1e-1, f"bf16-path mismatch vs reference, max err {err_bf16}"
    print("KERNEL_OK")
</pallas_src>

<mosaic_0001>
module attributes {stable_mosaic.version = 11 : i64} {
  func.func @_mha_ln_kernel(%arg0: i32, %arg1: memref<1x8x32xf32, #tpu.memory_space<vmem>>, %arg2: memref<32x96xbf16, #tpu.memory_space<vmem>>, %arg3: memref<1x96xf32, #tpu.memory_space<vmem>>, %arg4: memref<8x4x32xbf16, #tpu.memory_space<vmem>>, %arg5: memref<1x32xf32, #tpu.memory_space<vmem>>, %arg6: memref<1x32xf32, #tpu.memory_space<vmem>>, %arg7: memref<1x32xf32, #tpu.memory_space<vmem>>, %arg8: memref<1x8x32xf32, #tpu.memory_space<vmem>>) attributes {dimension_semantics = [#tpu.dimension_semantics<parallel>], iteration_bounds = array<i64: 2>, scalar_prefetch = 0 : i64, scratch_operands = 0 : i64, tpu.core_type = #tpu.core_type<tc>, window_params = [{transform_indices = @transform_0, window_bounds = array<i64: 1, 8, 32>}, {pipeline_mode = #tpu.pipeline_mode<synchronous>, transform_indices = @transform_1, window_bounds = array<i64: 32, 96>}, {pipeline_mode = #tpu.pipeline_mode<synchronous>, transform_indices = @transform_2, window_bounds = array<i64: 1, 96>}, {pipeline_mode = #tpu.pipeline_mode<synchronous>, transform_indices = @transform_3, window_bounds = array<i64: 8, 4, 32>}, {pipeline_mode = #tpu.pipeline_mode<synchronous>, transform_indices = @transform_4, window_bounds = array<i64: 1, 32>}, {pipeline_mode = #tpu.pipeline_mode<synchronous>, transform_indices = @transform_5, window_bounds = array<i64: 1, 32>}, {pipeline_mode = #tpu.pipeline_mode<synchronous>, transform_indices = @transform_6, window_bounds = array<i64: 1, 32>}, {transform_indices = @transform_7, window_bounds = array<i64: 1, 8, 32>}]} {
    %c0 = arith.constant 0 : index
    %c0_0 = arith.constant 0 : index
    %c0_1 = arith.constant 0 : index
    %0 = vector.load %arg1[%c0, %c0_0, %c0_1] : memref<1x8x32xf32, #tpu.memory_space<vmem>>, vector<1x8x32xf32>
    %1 = vector.shape_cast %0 : vector<1x8x32xf32> to vector<8x32xf32>
    %2 = arith.truncf %1 : vector<8x32xf32> to vector<8x32xbf16>
    %c0_2 = arith.constant 0 : index
    %c0_3 = arith.constant 0 : index
    %3 = vector.load %arg2[%c0_2, %c0_3] : memref<32x96xbf16, #tpu.memory_space<vmem>>, vector<32x96xbf16>
    %cst = arith.constant dense<0.000000e+00> : vector<8x96xf32>
    %4 = tpu.matmul %2, %3, %cst {dimension_numbers = #tpu.dot_dimension_numbers<[1], [0], [0], [1], [0, 0, 1, 1], [], []>} : vector<8x32xbf16>, vector<32x96xbf16>, vector<8x96xf32> -> vector<8x96xf32>
    %c0_4 = arith.constant 0 : index
    %c0_5 = arith.constant 0 : index
    %5 = vector.load %arg3[%c0_4, %c0_5] : memref<1x96xf32, #tpu.memory_space<vmem>>, vector<1x96xf32>
    %6 = vector.broadcast %5 : vector<1x96xf32> to vector<8x96xf32>
    %7 = arith.addf %4, %6 : vector<8x96xf32>
    %8 = vector.extract_strided_slice %7 {offsets = [0, 0], sizes = [8, 32], strides = [1, 1]} : vector<8x96xf32> to vector<8x32xf32>
    %9 = vector.extract_strided_slice %7 {offsets = [0, 32], sizes = [8, 32], strides = [1, 1]} : vector<8x96xf32> to vector<8x32xf32>
    %10 = vector.extract_strided_slice %7 {offsets = [0, 64], sizes = [8, 32], strides = [1, 1]} : vector<8x96xf32> to vector<8x32xf32>
    %cst_6 = arith.constant 0.000000e+00 : f32
    %11 = vector.broadcast %cst_6 : f32 to vector<8x32xf32>
    %12 = vector.extract_strided_slice %8 {offsets = [0, 0], sizes = [8, 4], strides = [1, 1]} : vector<8x32xf32> to vector<8x4xf32>
    %13 = arith.truncf %12 : vector<8x4xf32> to vector<8x4xbf16>
    %14 = vector.extract_strided_slice %9 {offsets = [0, 0], sizes = [8, 4], strides = [1, 1]} : vector<8x32xf32> to vector<8x4xf32>
    %15 = arith.truncf %14 : vector<8x4xf32> to vector<8x4xbf16>
    %16 = vector.extract_strided_slice %10 {offsets = [0, 0], sizes = [8, 4], strides = [1, 1]} : vector<8x32xf32> to vector<8x4xf32>
    %17 = arith.truncf %16 : vector<8x4xf32> to vector<8x4xbf16>
    "tpu.trace_start"() <{level = 10 : i32, message = "qd,kd->qk"}> : () -> ()
    %cst_7 = arith.constant dense<0.000000e+00> : vector<8x8xf32>
    %18 = tpu.matmul %13, %15, %cst_7 {dimension_numbers = #tpu.dot_dimension_numbers<[1], [1], [0], [0], [0, 0, 1, 0], [], []>} : vector<8x4xbf16>, vector<8x4xbf16>, vector<8x8xf32> -> vector<8x8xf32>
    "tpu.trace_stop"() : () -> ()
    %cst_8 = arith.constant dense<0xFF800000> : vector<8xf32>
    %19 = vector.multi_reduction <maximumf>, %18, %cst_8 [1] : vector<8x8xf32> to vector<8xf32>
    %20 = vector.shape_cast %19 : vector<8xf32> to vector<8x1xf32>
    %21 = vector.broadcast %20 : vector<8x1xf32> to vector<8x8xf32>
    %22 = arith.subf %18, %21 : vector<8x8xf32>
    %23 = math.exp %22 : vector<8x8xf32>
    %cst_9 = arith.constant dense<0.000000e+00> : vector<8xf32>
    %24 = vector.multi_reduction <add>, %23, %cst_9 [1] : vector<8x8xf32> to vector<8xf32>
    %25 = vector.shape_cast %24 : vector<8xf32> to vector<8x1xf32>
    %26 = tpu.reciprocal %25 {approx = true} : vector<8x1xf32> -> vector<8x1xf32>
    %27 = vector.broadcast %26 : vector<8x1xf32> to vector<8x8xf32>
    %28 = arith.mulf %23, %27 : vector<8x8xf32>
    %29 = arith.truncf %28 : vector<8x8xf32> to vector<8x8xbf16>
    %cst_10 = arith.constant dense<0.000000e+00> : vector<8x4xf32>
    %30 = tpu.matmul %29, %17, %cst_10 {dimension_numbers = #tpu.dot_dimension_numbers<[1], [0], [0], [1], [0, 0, 1, 1], [], []>} : vector<8x8xbf16>, vector<8x4xbf16>, vector<8x4xf32> -> vector<8x4xf32>
    %31 = arith.truncf %30 : vector<8x4xf32> to vector<8x4xbf16>
    %c0_11 = arith.constant 0 : index
    %c0_12 = arith.constant 0 : index
    %c0_13 = arith.constant 0 : index
    %32 = vector.load %arg4[%c0_11, %c0_12, %c0_13] : memref<8x4x32xbf16, #tpu.memory_space<vmem>>, vector<1x4x32xbf16>
    %33 = vector.shape_cast %32 : vector<1x4x32xbf16> to vector<4x32xbf16>
    %cst_14 = arith.constant dense<0.000000e+00> : vector<8x32xf32>
    %34 = tpu.matmul %31, %33, %cst_14 {dimension_numbers = #tpu.dot_dimension_numbers<[1], [0], [0], [1], [0, 0, 1, 1], [], []>} : vector<8x4xbf16>, vector<4x32xbf16>, vector<8x32xf32> -> vector<8x32xf32>
    %35 = arith.addf %11, %34 : vector<8x32xf32>
    %36 = vector.extract_strided_slice %8 {offsets = [0, 4], sizes = [8, 4], strides = [1, 1]} : vector<8x32xf32> to vector<8x4xf32>
    %37 = arith.truncf %36 : vector<8x4xf32> to vector<8x4xbf16>
    %38 = vector.extract_strided_slice %9 {offsets = [0, 4], sizes = [8, 4], strides = [1, 1]} : vector<8x32xf32> to vector<8x4xf32>
    %39 = arith.truncf %38 : vector<8x4xf32> to vector<8x4xbf16>
    %40 = vector.extract_strided_slice %10 {offsets = [0, 4], sizes = [8, 4], strides = [1, 1]} : vector<8x32xf32> to vector<8x4xf32>
    %41 = arith.truncf %40 : vector<8x4xf32> to vector<8x4xbf16>
    "tpu.trace_start"() <{level = 10 : i32, message = "qd,kd->qk"}> : () -> ()
    %cst_15 = arith.constant dense<0.000000e+00> : vector<8x8xf32>
    %42 = tpu.matmul %37, %39, %cst_15 {dimension_numbers = #tpu.dot_dimension_numbers<[1], [1], [0], [0], [0, 0, 1, 0], [], []>} : vector<8x4xbf16>, vector<8x4xbf16>, vector<8x8xf32> -> vector<8x8xf32>
    "tpu.trace_stop"() : () -> ()
    %cst_16 = arith.constant dense<0xFF800000> : vector<8xf32>
    %43 = vector.multi_reduction <maximumf>, %42, %cst_16 [1] : vector<8x8xf32> to vector<8xf32>
    %44 = vector.shape_cast %43 : vector<8xf32> to vector<8x1xf32>
    %45 = vector.broadcast %44 : vector<8x1xf32> to vector<8x8xf32>
    %46 = arith.subf %42, %45 : vector<8x8xf32>
    %47 = math.exp %46 : vector<8x8xf32>
    %cst_17 = arith.constant dense<0.000000e+00> : vector<8xf32>
    %48 = vector.multi_reduction <add>, %47, %cst_17 [1] : vector<8x8xf32> to vector<8xf32>
    %49 = vector.shape_cast %48 : vector<8xf32> to vector<8x1xf32>
    %50 = tpu.reciprocal %49 {approx = true} : vector<8x1xf32> -> vector<8x1xf32>
    %51 = vector.broadcast %50 : vector<8x1xf32> to vector<8x8xf32>
    %52 = arith.mulf %47, %51 : vector<8x8xf32>
    %53 = arith.truncf %52 : vector<8x8xf32> to vector<8x8xbf16>
    %cst_18 = arith.constant dense<0.000000e+00> : vector<8x4xf32>
    %54 = tpu.matmul %53, %41, %cst_18 {dimension_numbers = #tpu.dot_dimension_numbers<[1], [0], [0], [1], [0, 0, 1, 1], [], []>} : vector<8x8xbf16>, vector<8x4xbf16>, vector<8x4xf32> -> vector<8x4xf32>
    %55 = arith.truncf %54 : vector<8x4xf32> to vector<8x4xbf16>
    %c1 = arith.constant 1 : index
    %c0_19 = arith.constant 0 : index
    %c0_20 = arith.constant 0 : index
    %56 = vector.load %arg4[%c1, %c0_19, %c0_20] : memref<8x4x32xbf16, #tpu.memory_space<vmem>>, vector<1x4x32xbf16>
    %57 = vector.shape_cast %56 : vector<1x4x32xbf16> to vector<4x32xbf16>
    %cst_21 = arith.constant dense<0.000000e+00> : vector<8x32xf32>
    %58 = tpu.matmul %55, %57, %cst_21 {dimension_numbers = #tpu.dot_dimension_numbers<[1], [0], [0], [1], [0, 0, 1, 1], [], []>} : vector<8x4xbf16>, vector<4x32xbf16>, vector<8x32xf32> -> vector<8x32xf32>
    %59 = arith.addf %35, %58 : vector<8x32xf32>
    %60 = vector.extract_strided_slice %8 {offsets = [0, 8], sizes = [8, 4], strides = [1, 1]} : vector<8x32xf32> to vector<8x4xf32>
    %61 = arith.truncf %60 : vector<8x4xf32> to vector<8x4xbf16>
    %62 = vector.extract_strided_slice %9 {offsets = [0, 8], sizes = [8, 4], strides = [1, 1]} : vector<8x32xf32> to vector<8x4xf32>
    %63 = arith.truncf %62 : vector<8x4xf32> to vector<8x4xbf16>
    %64 = vector.extract_strided_slice %10 {offsets = [0, 8], sizes = [8, 4], strides = [1, 1]} : vector<8x32xf32> to vector<8x4xf32>
    %65 = arith.truncf %64 : vector<8x4xf32> to vector<8x4xbf16>
    "tpu.trace_start"() <{level = 10 : i32, message = "qd,kd->qk"}> : () -> ()
    %cst_22 = arith.constant dense<0.000000e+00> : vector<8x8xf32>
    %66 = tpu.matmul %61, %63, %cst_22 {dimension_numbers = #tpu.dot_dimension_numbers<[1], [1], [0], [0], [0, 0, 1, 0], [], []>} : vector<8x4xbf16>, vector<8x4xbf16>, vector<8x8xf32> -> vector<8x8xf32>
    "tpu.trace_stop"() : () -> ()
    %cst_23 = arith.constant dense<0xFF800000> : vector<8xf32>
    %67 = vector.multi_reduction <maximumf>, %66, %cst_23 [1] : vector<8x8xf32> to vector<8xf32>
    %68 = vector.shape_cast %67 : vector<8xf32> to vector<8x1xf32>
    %69 = vector.broadcast %68 : vector<8x1xf32> to vector<8x8xf32>
    %70 = arith.subf %66, %69 : vector<8x8xf32>
    %71 = math.exp %70 : vector<8x8xf32>
    %cst_24 = arith.constant dense<0.000000e+00> : vector<8xf32>
    %72 = vector.multi_reduction <add>, %71, %cst_24 [1] : vector<8x8xf32> to vector<8xf32>
    %73 = vector.shape_cast %72 : vector<8xf32> to vector<8x1xf32>
    %74 = tpu.reciprocal %73 {approx = true} : vector<8x1xf32> -> vector<8x1xf32>
    %75 = vector.broadcast %74 : vector<8x1xf32> to vector<8x8xf32>
    %76 = arith.mulf %71, %75 : vector<8x8xf32>
    %77 = arith.truncf %76 : vector<8x8xf32> to vector<8x8xbf16>
    %cst_25 = arith.constant dense<0.000000e+00> : vector<8x4xf32>
    %78 = tpu.matmul %77, %65, %cst_25 {dimension_numbers = #tpu.dot_dimension_numbers<[1], [0], [0], [1], [0, 0, 1, 1], [], []>} : vector<8x8xbf16>, vector<8x4xbf16>, vector<8x4xf32> -> vector<8x4xf32>
    %79 = arith.truncf %78 : vector<8x4xf32> to vector<8x4xbf16>
    %c2 = arith.constant 2 : index
    %c0_26 = arith.constant 0 : index
    %c0_27 = arith.constant 0 : index
    %80 = vector.load %arg4[%c2, %c0_26, %c0_27] : memref<8x4x32xbf16, #tpu.memory_space<vmem>>, vector<1x4x32xbf16>
    %81 = vector.shape_cast %80 : vector<1x4x32xbf16> to vector<4x32xbf16>
    %cst_28 = arith.constant dense<0.000000e+00> : vector<8x32xf32>
    %82 = tpu.matmul %79, %81, %cst_28 {dimension_numbers = #tpu.dot_dimension_numbers<[1], [0], [0], [1], [0, 0, 1, 1], [], []>} : vector<8x4xbf16>, vector<4x32xbf16>, vector<8x32xf32> -> vector<8x32xf32>
    %83 = arith.addf %59, %82 : vector<8x32xf32>
    %84 = vector.extract_strided_slice %8 {offsets = [0, 12], sizes = [8, 4], strides = [1, 1]} : vector<8x32xf32> to vector<8x4xf32>
    %85 = arith.truncf %84 : vector<8x4xf32> to vector<8x4xbf16>
    %86 = vector.extract_strided_slice %9 {offsets = [0, 12], sizes = [8, 4], strides = [1, 1]} : vector<8x32xf32> to vector<8x4xf32>
    %87 = arith.truncf %86 : vector<8x4xf32> to vector<8x4xbf16>
    %88 = vector.extract_strided_slice %10 {offsets = [0, 12], sizes = [8, 4], strides = [1, 1]} : vector<8x32xf32> to vector<8x4xf32>
    %89 = arith.truncf %88 : vector<8x4xf32> to vector<8x4xbf16>
    "tpu.trace_start"() <{level = 10 : i32, message = "qd,kd->qk"}> : () -> ()
    %cst_29 = arith.constant dense<0.000000e+00> : vector<8x8xf32>
    %90 = tpu.matmul %85, %87, %cst_29 {dimension_numbers = #tpu.dot_dimension_numbers<[1], [1], [0], [0], [0, 0, 1, 0], [], []>} : vector<8x4xbf16>, vector<8x4xbf16>, vector<8x8xf32> -> vector<8x8xf32>
    "tpu.trace_stop"() : () -> ()
    %cst_30 = arith.constant dense<0xFF800000> : vector<8xf32>
    %91 = vector.multi_reduction <maximumf>, %90, %cst_30 [1] : vector<8x8xf32> to vector<8xf32>
    %92 = vector.shape_cast %91 : vector<8xf32> to vector<8x1xf32>
    %93 = vector.broadcast %92 : vector<8x1xf32> to vector<8x8xf32>
    %94 = arith.subf %90, %93 : vector<8x8xf32>
    %95 = math.exp %94 : vector<8x8xf32>
    %cst_31 = arith.constant dense<0.000000e+00> : vector<8xf32>
    %96 = vector.multi_reduction <add>, %95, %cst_31 [1] : vector<8x8xf32> to vector<8xf32>
    %97 = vector.shape_cast %96 : vector<8xf32> to vector<8x1xf32>
    %98 = tpu.reciprocal %97 {approx = true} : vector<8x1xf32> -> vector<8x1xf32>
    %99 = vector.broadcast %98 : vector<8x1xf32> to vector<8x8xf32>
    %100 = arith.mulf %95, %99 : vector<8x8xf32>
    %101 = arith.truncf %100 : vector<8x8xf32> to vector<8x8xbf16>
    %cst_32 = arith.constant dense<0.000000e+00> : vector<8x4xf32>
    %102 = tpu.matmul %101, %89, %cst_32 {dimension_numbers = #tpu.dot_dimension_numbers<[1], [0], [0], [1], [0, 0, 1, 1], [], []>} : vector<8x8xbf16>, vector<8x4xbf16>, vector<8x4xf32> -> vector<8x4xf32>
    %103 = arith.truncf %102 : vector<8x4xf32> to vector<8x4xbf16>
    %c3 = arith.constant 3 : index
    %c0_33 = arith.constant 0 : index
    %c0_34 = arith.constant 0 : index
    %104 = vector.load %arg4[%c3, %c0_33, %c0_34] : memref<8x4x32xbf16, #tpu.memory_space<vmem>>, vector<1x4x32xbf16>
    %105 = vector.shape_cast %104 : vector<1x4x32xbf16> to vector<4x32xbf16>
    %cst_35 = arith.constant dense<0.000000e+00> : vector<8x32xf32>
    %106 = tpu.matmul %103, %105, %cst_35 {dimension_numbers = #tpu.dot_dimension_numbers<[1], [0], [0], [1], [0, 0, 1, 1], [], []>} : vector<8x4xbf16>, vector<4x32xbf16>, vector<8x32xf32> -> vector<8x32xf32>
    %107 = arith.addf %83, %106 : vector<8x32xf32>
    %108 = vector.extract_strided_slice %8 {offsets = [0, 16], sizes = [8, 4], strides = [1, 1]} : vector<8x32xf32> to vector<8x4xf32>
    %109 = arith.truncf %108 : vector<8x4xf32> to vector<8x4xbf16>
    %110 = vector.extract_strided_slice %9 {offsets = [0, 16], sizes = [8, 4], strides = [1, 1]} : vector<8x32xf32> to vector<8x4xf32>
    %111 = arith.truncf %110 : vector<8x4xf32> to vector<8x4xbf16>
    %112 = vector.extract_strided_slice %10 {offsets = [0, 16], sizes = [8, 4], strides = [1, 1]} : vector<8x32xf32> to vector<8x4xf32>
    %113 = arith.truncf %112 : vector<8x4xf32> to vector<8x4xbf16>
    "tpu.trace_start"() <{level = 10 : i32, message = "qd,kd->qk"}> : () -> ()
    %cst_36 = arith.constant dense<0.000000e+00> : vector<8x8xf32>
    %114 = tpu.matmul %109, %111, %cst_36 {dimension_numbers = #tpu.dot_dimension_numbers<[1], [1], [0], [0], [0, 0, 1, 0], [], []>} : vector<8x4xbf16>, vector<8x4xbf16>, vector<8x8xf32> -> vector<8x8xf32>
    "tpu.trace_stop"() : () -> ()
    %cst_37 = arith.constant dense<0xFF800000> : vector<8xf32>
    %115 = vector.multi_reduction <maximumf>, %114, %cst_37 [1] : vector<8x8xf32> to vector<8xf32>
    %116 = vector.shape_cast %115 : vector<8xf32> to vector<8x1xf32>
    %117 = vector.broadcast %116 : vector<8x1xf32> to vector<8x8xf32>
    %118 = arith.subf %114, %117 : vector<8x8xf32>
    %119 = math.exp %118 : vector<8x8xf32>
    %cst_38 = arith.constant dense<0.000000e+00> : vector<8xf32>
    %120 = vector.multi_reduction <add>, %119, %cst_38 [1] : vector<8x8xf32> to vector<8xf32>
    %121 = vector.shape_cast %120 : vector<8xf32> to vector<8x1xf32>
    %122 = tpu.reciprocal %121 {approx = true} : vector<8x1xf32> -> vector<8x1xf32>
    %123 = vector.broadcast %122 : vector<8x1xf32> to vector<8x8xf32>
    %124 = arith.mulf %119, %123 : vector<8x8xf32>
    %125 = arith.truncf %124 : vector<8x8xf32> to vector<8x8xbf16>
    %cst_39 = arith.constant dense<0.000000e+00> : vector<8x4xf32>
    %126 = tpu.matmul %125, %113, %cst_39 {dimension_numbers = #tpu.dot_dimension_numbers<[1], [0], [0], [1], [0, 0, 1, 1], [], []>} : vector<8x8xbf16>, vector<8x4xbf16>, vector<8x4xf32> -> vector<8x4xf32>
    %127 = arith.truncf %126 : vector<8x4xf32> to vector<8x4xbf16>
    %c4 = arith.constant 4 : index
    %c0_40 = arith.constant 0 : index
    %c0_41 = arith.constant 0 : index
    %128 = vector.load %arg4[%c4, %c0_40, %c0_41] : memref<8x4x32xbf16, #tpu.memory_space<vmem>>, vector<1x4x32xbf16>
    %129 = vector.shape_cast %128 : vector<1x4x32xbf16> to vector<4x32xbf16>
    %cst_42 = arith.constant dense<0.000000e+00> : vector<8x32xf32>
    %130 = tpu.matmul %127, %129, %cst_42 {dimension_numbers = #tpu.dot_dimension_numbers<[1], [0], [0], [1], [0, 0, 1, 1], [], []>} : vector<8x4xbf16>, vector<4x32xbf16>, vector<8x32xf32> -> vector<8x32xf32>
    %131 = arith.addf %107, %130 : vector<8x32xf32>
    %132 = vector.extract_strided_slice %8 {offsets = [0, 20], sizes = [8, 4], strides = [1, 1]} : vector<8x32xf32> to vector<8x4xf32>
    %133 = arith.truncf %132 : vector<8x4xf32> to vector<8x4xbf16>
    %134 = vector.extract_strided_slice %9 {offsets = [0, 20], sizes = [8, 4], strides = [1, 1]} : vector<8x32xf32> to vector<8x4xf32>
    %135 = arith.truncf %134 : vector<8x4xf32> to vector<8x4xbf16>
    %136 = vector.extract_strided_slice %10 {offsets = [0, 20], sizes = [8, 4], strides = [1, 1]} : vector<8x32xf32> to vector<8x4xf32>
    %137 = arith.truncf %136 : vector<8x4xf32> to vector<8x4xbf16>
    "tpu.trace_start"() <{level = 10 : i32, message = "qd,kd->qk"}> : () -> ()
    %cst_43 = arith.constant dense<0.000000e+00> : vector<8x8xf32>
    %138 = tpu.matmul %133, %135, %cst_43 {dimension_numbers = #tpu.dot_dimension_numbers<[1], [1], [0], [0], [0, 0, 1, 0], [], []>} : vector<8x4xbf16>, vector<8x4xbf16>, vector<8x8xf32> -> vector<8x8xf32>
    "tpu.trace_stop"() : () -> ()
    %cst_44 = arith.constant dense<0xFF800000> : vector<8xf32>
    %139 = vector.multi_reduction <maximumf>, %138, %cst_44 [1] : vector<8x8xf32> to vector<8xf32>
    %140 = vector.shape_cast %139 : vector<8xf32> to vector<8x1xf32>
    %141 = vector.broadcast %140 : vector<8x1xf32> to vector<8x8xf32>
    %142 = arith.subf %138, %141 : vector<8x8xf32>
    %143 = math.exp %142 : vector<8x8xf32>
    %cst_45 = arith.constant dense<0.000000e+00> : vector<8xf32>
    %144 = vector.multi_reduction <add>, %143, %cst_45 [1] : vector<8x8xf32> to vector<8xf32>
    %145 = vector.shape_cast %144 : vector<8xf32> to vector<8x1xf32>
    %146 = tpu.reciprocal %145 {approx = true} : vector<8x1xf32> -> vector<8x1xf32>
    %147 = vector.broadcast %146 : vector<8x1xf32> to vector<8x8xf32>
    %148 = arith.mulf %143, %147 : vector<8x8xf32>
    %149 = arith.truncf %148 : vector<8x8xf32> to vector<8x8xbf16>
    %cst_46 = arith.constant dense<0.000000e+00> : vector<8x4xf32>
    %150 = tpu.matmul %149, %137, %cst_46 {dimension_numbers = #tpu.dot_dimension_numbers<[1], [0], [0], [1], [0, 0, 1, 1], [], []>} : vector<8x8xbf16>, vector<8x4xbf16>, vector<8x4xf32> -> vector<8x4xf32>
    %151 = arith.truncf %150 : vector<8x4xf32> to vector<8x4xbf16>
    %c5 = arith.constant 5 : index
    %c0_47 = arith.constant 0 : index
    %c0_48 = arith.constant 0 : index
    %152 = vector.load %arg4[%c5, %c0_47, %c0_48] : memref<8x4x32xbf16, #tpu.memory_space<vmem>>, vector<1x4x32xbf16>
    %153 = vector.shape_cast %152 : vector<1x4x32xbf16> to vector<4x32xbf16>
    %cst_49 = arith.constant dense<0.000000e+00> : vector<8x32xf32>
    %154 = tpu.matmul %151, %153, %cst_49 {dimension_numbers = #tpu.dot_dimension_numbers<[1], [0], [0], [1], [0, 0, 1, 1], [], []>} : vector<8x4xbf16>, vector<4x32xbf16>, vector<8x32xf32> -> vector<8x32xf32>
    %155 = arith.addf %131, %154 : vector<8x32xf32>
    %156 = vector.extract_strided_slice %8 {offsets = [0, 24], sizes = [8, 4], strides = [1, 1]} : vector<8x32xf32> to vector<8x4xf32>
    %157 = arith.truncf %156 : vector<8x4xf32> to vector<8x4xbf16>
    %158 = vector.extract_strided_slice %9 {offsets = [0, 24], sizes = [8, 4], strides = [1, 1]} : vector<8x32xf32> to vector<8x4xf32>
    %159 = arith.truncf %158 : vector<8x4xf32> to vector<8x4xbf16>
    %160 = vector.extract_strided_slice %10 {offsets = [0, 24], sizes = [8, 4], strides = [1, 1]} : vector<8x32xf32> to vector<8x4xf32>
    %161 = arith.truncf %160 : vector<8x4xf32> to vector<8x4xbf16>
    "tpu.trace_start"() <{level = 10 : i32, message = "qd,kd->qk"}> : () -> ()
    %cst_50 = arith.constant dense<0.000000e+00> : vector<8x8xf32>
    %162 = tpu.matmul %157, %159, %cst_50 {dimension_numbers = #tpu.dot_dimension_numbers<[1], [1], [0], [0], [0, 0, 1, 0], [], []>} : vector<8x4xbf16>, vector<8x4xbf16>, vector<8x8xf32> -> vector<8x8xf32>
    "tpu.trace_stop"() : () -> ()
    %cst_51 = arith.constant dense<0xFF800000> : vector<8xf32>
    %163 = vector.multi_reduction <maximumf>, %162, %cst_51 [1] : vector<8x8xf32> to vector<8xf32>
    %164 = vector.shape_cast %163 : vector<8xf32> to vector<8x1xf32>
    %165 = vector.broadcast %164 : vector<8x1xf32> to vector<8x8xf32>
    %166 = arith.subf %162, %165 : vector<8x8xf32>
    %167 = math.exp %166 : vector<8x8xf32>
    %cst_52 = arith.constant dense<0.000000e+00> : vector<8xf32>
    %168 = vector.multi_reduction <add>, %167, %cst_52 [1] : vector<8x8xf32> to vector<8xf32>
    %169 = vector.shape_cast %168 : vector<8xf32> to vector<8x1xf32>
    %170 = tpu.reciprocal %169 {approx = true} : vector<8x1xf32> -> vector<8x1xf32>
    %171 = vector.broadcast %170 : vector<8x1xf32> to vector<8x8xf32>
    %172 = arith.mulf %167, %171 : vector<8x8xf32>
    %173 = arith.truncf %172 : vector<8x8xf32> to vector<8x8xbf16>
    %cst_53 = arith.constant dense<0.000000e+00> : vector<8x4xf32>
    %174 = tpu.matmul %173, %161, %cst_53 {dimension_numbers = #tpu.dot_dimension_numbers<[1], [0], [0], [1], [0, 0, 1, 1], [], []>} : vector<8x8xbf16>, vector<8x4xbf16>, vector<8x4xf32> -> vector<8x4xf32>
    %175 = arith.truncf %174 : vector<8x4xf32> to vector<8x4xbf16>
    %c6 = arith.constant 6 : index
    %c0_54 = arith.constant 0 : index
    %c0_55 = arith.constant 0 : index
    %176 = vector.load %arg4[%c6, %c0_54, %c0_55] : memref<8x4x32xbf16, #tpu.memory_space<vmem>>, vector<1x4x32xbf16>
    %177 = vector.shape_cast %176 : vector<1x4x32xbf16> to vector<4x32xbf16>
    %cst_56 = arith.constant dense<0.000000e+00> : vector<8x32xf32>
    %178 = tpu.matmul %175, %177, %cst_56 {dimension_numbers = #tpu.dot_dimension_numbers<[1], [0], [0], [1], [0, 0, 1, 1], [], []>} : vector<8x4xbf16>, vector<4x32xbf16>, vector<8x32xf32> -> vector<8x32xf32>
    %179 = arith.addf %155, %178 : vector<8x32xf32>
    %180 = vector.extract_strided_slice %8 {offsets = [0, 28], sizes = [8, 4], strides = [1, 1]} : vector<8x32xf32> to vector<8x4xf32>
    %181 = arith.truncf %180 : vector<8x4xf32> to vector<8x4xbf16>
    %182 = vector.extract_strided_slice %9 {offsets = [0, 28], sizes = [8, 4], strides = [1, 1]} : vector<8x32xf32> to vector<8x4xf32>
    %183 = arith.truncf %182 : vector<8x4xf32> to vector<8x4xbf16>
    %184 = vector.extract_strided_slice %10 {offsets = [0, 28], sizes = [8, 4], strides = [1, 1]} : vector<8x32xf32> to vector<8x4xf32>
    %185 = arith.truncf %184 : vector<8x4xf32> to vector<8x4xbf16>
    "tpu.trace_start"() <{level = 10 : i32, message = "qd,kd->qk"}> : () -> ()
    %cst_57 = arith.constant dense<0.000000e+00> : vector<8x8xf32>
    %186 = tpu.matmul %181, %183, %cst_57 {dimension_numbers = #tpu.dot_dimension_numbers<[1], [1], [0], [0], [0, 0, 1, 0], [], []>} : vector<8x4xbf16>, vector<8x4xbf16>, vector<8x8xf32> -> vector<8x8xf32>
    "tpu.trace_stop"() : () -> ()
    %cst_58 = arith.constant dense<0xFF800000> : vector<8xf32>
    %187 = vector.multi_reduction <maximumf>, %186, %cst_58 [1] : vector<8x8xf32> to vector<8xf32>
    %188 = vector.shape_cast %187 : vector<8xf32> to vector<8x1xf32>
    %189 = vector.broadcast %188 : vector<8x1xf32> to vector<8x8xf32>
    %190 = arith.subf %186, %189 : vector<8x8xf32>
    %191 = math.exp %190 : vector<8x8xf32>
    %cst_59 = arith.constant dense<0.000000e+00> : vector<8xf32>
    %192 = vector.multi_reduction <add>, %191, %cst_59 [1] : vector<8x8xf32> to vector<8xf32>
    %193 = vector.shape_cast %192 : vector<8xf32> to vector<8x1xf32>
    %194 = tpu.reciprocal %193 {approx = true} : vector<8x1xf32> -> vector<8x1xf32>
    %195 = vector.broadcast %194 : vector<8x1xf32> to vector<8x8xf32>
    %196 = arith.mulf %191, %195 : vector<8x8xf32>
    %197 = arith.truncf %196 : vector<8x8xf32> to vector<8x8xbf16>
    %cst_60 = arith.constant dense<0.000000e+00> : vector<8x4xf32>
    %198 = tpu.matmul %197, %185, %cst_60 {dimension_numbers = #tpu.dot_dimension_numbers<[1], [0], [0], [1], [0, 0, 1, 1], [], []>} : vector<8x8xbf16>, vector<8x4xbf16>, vector<8x4xf32> -> vector<8x4xf32>
    %199 = arith.truncf %198 : vector<8x4xf32> to vector<8x4xbf16>
    %c7 = arith.constant 7 : index
    %c0_61 = arith.constant 0 : index
    %c0_62 = arith.constant 0 : index
    %200 = vector.load %arg4[%c7, %c0_61, %c0_62] : memref<8x4x32xbf16, #tpu.memory_space<vmem>>, vector<1x4x32xbf16>
    %201 = vector.shape_cast %200 : vector<1x4x32xbf16> to vector<4x32xbf16>
    %cst_63 = arith.constant dense<0.000000e+00> : vector<8x32xf32>
    %202 = tpu.matmul %199, %201, %cst_63 {dimension_numbers = #tpu.dot_dimension_numbers<[1], [0], [0], [1], [0, 0, 1, 1], [], []>} : vector<8x4xbf16>, vector<4x32xbf16>, vector<8x32xf32> -> vector<8x32xf32>
    %203 = arith.addf %179, %202 : vector<8x32xf32>
    %204 = arith.addf %1, %203 : vector<8x32xf32>
    %c0_64 = arith.constant 0 : index
    %c0_65 = arith.constant 0 : index
    %205 = vector.load %arg5[%c0_64, %c0_65] : memref<1x32xf32, #tpu.memory_space<vmem>>, vector<1x32xf32>
    %206 = vector.broadcast %205 : vector<1x32xf32> to vector<8x32xf32>
    %207 = arith.addf %204, %206 : vector<8x32xf32>
    %cst_66 = arith.constant dense<0.000000e+00> : vector<8xf32>
    %208 = vector.multi_reduction <add>, %207, %cst_66 [1] : vector<8x32xf32> to vector<8xf32>
    %209 = vector.shape_cast %208 : vector<8xf32> to vector<8x1xf32>
    %cst_67 = arith.constant 3.200000e+01 : f32
    %210 = vector.broadcast %cst_67 : f32 to vector<8x1xf32>
    %211 = arith.divf %209, %210 : vector<8x1xf32>
    %212 = vector.broadcast %211 : vector<8x1xf32> to vector<8x32xf32>
    %213 = arith.subf %207, %212 : vector<8x32xf32>
    %214 = arith.mulf %213, %213 : vector<8x32xf32>
    %cst_68 = arith.constant dense<0.000000e+00> : vector<8xf32>
    %215 = vector.multi_reduction <add>, %214, %cst_68 [1] : vector<8x32xf32> to vector<8xf32>
    %216 = vector.shape_cast %215 : vector<8xf32> to vector<8x1xf32>
    %cst_69 = arith.constant 3.200000e+01 : f32
    %217 = vector.broadcast %cst_69 : f32 to vector<8x1xf32>
    %218 = arith.divf %216, %217 : vector<8x1xf32>
    %219 = vector.broadcast %211 : vector<8x1xf32> to vector<8x32xf32>
    %220 = arith.subf %207, %219 : vector<8x32xf32>
    %cst_70 = arith.constant 9.99999974E-6 : f32
    %221 = vector.broadcast %cst_70 : f32 to vector<8x1xf32>
    %222 = arith.addf %218, %221 : vector<8x1xf32>
    %223 = math.rsqrt %222 : vector<8x1xf32>
    %224 = vector.broadcast %223 : vector<8x1xf32> to vector<8x32xf32>
    %225 = arith.mulf %220, %224 : vector<8x32xf32>
    %c0_71 = arith.constant 0 : index
    %c0_72 = arith.constant 0 : index
    %226 = vector.load %arg6[%c0_71, %c0_72] : memref<1x32xf32, #tpu.memory_space<vmem>>, vector<1x32xf32>
    %227 = vector.broadcast %226 : vector<1x32xf32> to vector<8x32xf32>
    %228 = arith.mulf %225, %227 : vector<8x32xf32>
    %c0_73 = arith.constant 0 : index
    %c0_74 = arith.constant 0 : index
    %229 = vector.load %arg7[%c0_73, %c0_74] : memref<1x32xf32, #tpu.memory_space<vmem>>, vector<1x32xf32>
    %230 = vector.broadcast %229 : vector<1x32xf32> to vector<8x32xf32>
    %231 = arith.addf %228, %230 : vector<8x32xf32>
    %c0_75 = arith.constant 0 : index
    %c0_76 = arith.constant 0 : index
    %c0_77 = arith.constant 0 : index
    %232 = vector.load %arg8[%c0_75, %c0_76, %c0_77] : memref<1x8x32xf32, #tpu.memory_space<vmem>>, vector<1x8x32xf32>
    %233 = vector.shape_cast %232 : vector<1x8x32xf32> to vector<8x32xf32>
    %234 = vector.shape_cast %231 : vector<8x32xf32> to vector<1x8x32xf32>
    tpu.vector_store %arg8[%c0_75, %c0_76, %c0_77], %234 {strides = array<i32>} : memref<1x8x32xf32, #tpu.memory_space<vmem>>, vector<1x8x32xf32>,
    return
  }
  func.func @transform_0(%arg0: i32) -> (i32, i32, i32) {
    %c0_i32 = arith.constant 0 : i32
    %c0_i32_0 = arith.constant 0 : i32
    %c0_i32_1 = arith.constant 0 : i32
    return %arg0, %c0_i32, %c0_i32_0 : i32, i32, i32
  }
  func.func @transform_1(%arg0: i32) -> (i32, i32) {
    %c0_i32 = arith.constant 0 : i32
    %c0_i32_0 = arith.constant 0 : i32
    %c0_i32_1 = arith.constant 0 : i32
    return %c0_i32, %c0_i32_0 : i32, i32
  }
  func.func @transform_2(%arg0: i32) -> (i32, i32) {
    %c0_i32 = arith.constant 0 : i32
    %c0_i32_0 = arith.constant 0 : i32
    %c0_i32_1 = arith.constant 0 : i32
    return %c0_i32, %c0_i32_0 : i32, i32
  }
  func.func @transform_3(%arg0: i32) -> (i32, i32, i32) {
    %c0_i32 = arith.constant 0 : i32
    %c0_i32_0 = arith.constant 0 : i32
    %c0_i32_1 = arith.constant 0 : i32
    %c0_i32_2 = arith.constant 0 : i32
    return %c0_i32, %c0_i32_0, %c0_i32_1 : i32, i32, i32
  }
  func.func @transform_4(%arg0: i32) -> (i32, i32) {
    %c0_i32 = arith.constant 0 : i32
    %c0_i32_0 = arith.constant 0 : i32
    %c0_i32_1 = arith.constant 0 : i32
    return %c0_i32, %c0_i32_0 : i32, i32
  }
  func.func @transform_5(%arg0: i32) -> (i32, i32) {
    %c0_i32 = arith.constant 0 : i32
    %c0_i32_0 = arith.constant 0 : i32
    %c0_i32_1 = arith.constant 0 : i32
    return %c0_i32, %c0_i32_0 : i32, i32
  }
  func.func @transform_6(%arg0: i32) -> (i32, i32) {
    %c0_i32 = arith.constant 0 : i32
    %c0_i32_0 = arith.constant 0 : i32
    %c0_i32_1 = arith.constant 0 : i32
    return %c0_i32, %c0_i32_0 : i32, i32
  }
  func.func @transform_7(%arg0: i32) -> (i32, i32, i32) {
    %c0_i32 = arith.constant 0 : i32
    %c0_i32_0 = arith.constant 0 : i32
    %c0_i32_1 = arith.constant 0 : i32
    return %arg0, %c0_i32, %c0_i32_0 : i32, i32, i32
  }
}

</mosaic_0001>

<bundles_post_ra>
// kernel: tpu_custom_call.1
= control target key start
LH: loop header
LB: loop body
LE: loop exit
PB: predicated region body
PF: predicated region fallthrough
CT: control target
= control target key end

     0   :  { %12 = vsyncpa [#allocation3], 0  ;;  %s2853_s0 = inlined_call_operand.hbm [shape: f32[2,8,32], index: 0, kind: input, shape index: {}]   ;;  %s2854_s1 = inlined_call_operand.hbm [shape: bf16[32,96], index: 1, kind: input, shape index: {}]   ;;  %s2855_s2 = inlined_call_operand.vmem [shape: f32[1,96], index: 2, kind: input, shape index: {}]   ;;  %s2856_s3 = inlined_call_operand.hbm [shape: bf16[8,4,32], index: 3, kind: input, shape index: {}]   ;;  %s2857_s4 = inlined_call_operand.vmem [shape: f32[1,32], index: 4, kind: input, shape index: {}]   ;;  %s2858_s5 = inlined_call_operand.vmem [shape: f32[1,32], index: 5, kind: input, shape index: {}]   ;;  %s2859_s6 = inlined_call_operand.vmem [shape: f32[1,32], index: 6, kind: input, shape index: {}]   ;;  %s2860_s7 = inlined_call_operand.hbm [shape: f32[2,8,32], index: 7, kind: output, shape index: {}]  }
   0x1   :  { %14 = vsyncpa [#allocation3 + $0x1], 0 }
   0x2   :  { %15 = vsyncpa [#allocation6], 0 }
   0x3   :  { %16 = vsyncpa [#allocation4], 0 }
   0x4   :  { %18 = vsyncpa [#allocation4 + $0x1], 0  ;;  %s2430_s24 = smov 0   ;;  %s2432_s25 = smov 0  }
   0x5   :  { %s2434_s26 = smov 0   ;;  %s2436_s27 = smov 0  }
   0x6 LB: > { %s2451_s28 = sadd.s32 4294967295, %s2355_s27   ;;  %s1817_s29 = sadd.s32 4294967294, %s2355_s27   ;;  %s2355_s27 = sphi %s2436_s27, %s2880_s27   ;;  %s2351_s26 = sphi %s2434_s26, %s2879_s26   ;;  %s2347_s25 = sphi %s2432_s25, %s2878_s25   ;;  %s2343_s24 = sphi %s2430_s24, %s2877_s24  }
   0x7   : > { %p44_p0 = scmp.ne.s32.totalorder %s2347_s25, %s2343_s24  ;;  %p2861_p1 = scmp.eq.s32.totalorder %s2451_s28, 0 }
   0x8   : > { %p200_p3 = scmp.eq.s32.totalorder %s1817_s29, 1  ;;  %p1818_p5 = scmp.ge.s32.totalorder %s2355_s27, 1 }
   0x9   : > { %p2460_p4 = por %p2861_p1, %p44_p0  ;;  %p207_p7 = scmp.lt.s32.totalorder %s2355_s27, 3 }
   0xa   : > { %p2465_p6 = por %p200_p3, %p44_p0  ;;  %s2357_s10 = smov [#allocation5]  }
   0xb   : > { %s2864_s30 = scalar_select %p2460_p4, 1, 0 }
   0xc   : > { %s2865_s8 = scalar_select %p2465_p6, 1, 0 }
   0xd   : > { %p2470_p8 = pnand %p1818_p5, %p207_p7  ;;  %s219_s11 = sshll.u32 %s2357_s10, 4  ;;  %s2474_s11 = int_to_ptr.vmem [resolvable:$true] %s219_s11 }
   0xe   : > { %s2358_s13 = smov [#allocation7]   ;;  %s2199_s17 = scalar_lea.hbm %s2854_s1, 256 }
   0xf   : > { %p2079_p9 = pneg %p2470_p8  ;;  %s235_s14 = sshll.u32 %s2358_s13, 4  ;;  %s2485_s14 = int_to_ptr.vmem [resolvable:$true] %s235_s14 }
  0x10   : > { %p2200_p12 = scmp.ne.s32.totalorder %s2854_s1, %s2199_s17  ;;  %p2206_p5 = scmp.lt.u32.totalorder %s2199_s17, %s2854_s1 }
  0x11   : > { %p2481_p11 = pnand %p2079_p9, %p2861_p1 }
  0x13   : > { %p2201_p13 = pneg %p2481_p11 }
  0x15   : > { %p2202_p0 = pnand %p2201_p13, %p2200_p12 }
  0x17   : > { %p2203_p3 = pneg %p2202_p0 }
  0x19   : > { %p2208_p7 = pnand %p2206_p5, %p2203_p3 }
  0x1b   : > { %2211 = shalt.err (!%p2208_p7)
}
  0x1c   : > { %s2212_s22 = scalar_lea.vmem %s2474_s11, 256  ;;  %p2220_p2 = scmp.lt.s32.totalorder %s2474_s11, %s2474_s11 }
  0x1d   : > { %p2213_p9 = scmp.ne.s32.totalorder %s2474_s11, %s2212_s22  ;;  %p2221_p12 = scmp.lt.s32.totalorder %s2212_s22, %s2212_s22 }
  0x1f   : > { %p2215_p10 = pnand %p2213_p9, %p2201_p13  ;;  %p2222_p0 = por %p2221_p12, %p2220_p2 }
  0x21   : > { %p2216_p1 = pneg %p2215_p10 }
  0x23   : > { %p2223_p6 = pnand %p2222_p0, %p2216_p1 }
  0x25   : > { %2226 = shalt.err (!%p2223_p6)
}
  0x26   : > { %s2359_s23 = smov 64   ;;  %s2360_s29 = smov 4  }
  0x27   : > { %2082 = dma.hbm_to_vmem [thread:$0]  (!%p2481_p11), %s2854_s1, 256, %s2474_s11, [#allocation6], %s2359_s23, %s2359_s23, %s2360_s29  }
  0x28   : > { %s2227_s17 = scalar_lea.hbm %s2856_s3, 256 }
  0x29   : > { %p2228_p2 = scmp.ne.s32.totalorder %s2856_s3, %s2227_s17  ;;  %p2234_p10 = scmp.lt.u32.totalorder %s2227_s17, %s2856_s3 }
  0x2b   : > { %p2230_p1 = pnand %p2228_p2, %p2201_p13 }
  0x2d   : > { %p2231_p6 = pneg %p2230_p1 }
  0x2f   : > { %p2236_p3 = pnand %p2234_p10, %p2231_p6 }
  0x31   : > { %2239 = shalt.err (!%p2236_p3)
}
  0x32   : > { %s2240_s11 = scalar_lea.vmem %s2485_s14, 256  ;;  %p2248_p12 = scmp.lt.s32.totalorder %s2485_s14, %s2485_s14 }
  0x33   : > { %p2241_p5 = scmp.ne.s32.totalorder %s2485_s14, %s2240_s11  ;;  %p2249_p0 = scmp.lt.s32.totalorder %s2240_s11, %s2240_s11 }
  0x35   : > { %p2243_p7 = pnand %p2241_p5, %p2201_p13  ;;  %p2250_p2 = por %p2249_p0, %p2248_p12 }
  0x37   : > { %p2244_p9 = pneg %p2243_p7 }
  0x39   : > { %p2251_p1 = pnand %p2250_p2, %p2244_p9 }
  0x3b   : > { %2254 = shalt.err (!%p2251_p1)
}
  0x3c   : > { %s2361_s22 = smov 32   ;;  %s2362_s23 = smov 2  }
  0x3d   : > { %2085 = dma.hbm_to_vmem [thread:$0]  (!%p2481_p11), %s2856_s3, 256, %s2485_s14, [#allocation6], %s2361_s22, %s2361_s22, %s2362_s23  }
  0x3e   : > { %s2540_s13 = sadd.s32 1, %s2355_s27   ;;  %s31_s16 = sadd.s32 1, %s2351_s26 }
  0x3f   : > { %s28_s15 = ssub.s32 %s2355_s27, %s2540_s13  ;;  %p38_p6 = scmp.ne.s32.totalorder %s2351_s26, %s2347_s25 }
  0x40   : > { %p29_p13 = scmp.eq.s32.totalorder %s28_s15, 0  ;;  %p39_p10 = scmp.eq.s32.totalorder %s2355_s27, 0 }
  0x41   : > { %p2868_p5 = scmp.eq.s32.totalorder %s2451_s28, 1  ;;  %p2096_p9 = scmp.lt.s32.totalorder %s2355_s27, 2 }
  0x42   : > { %s2549_s17 = scalar_select %p29_p13, %s2351_s26, %s31_s16  }
  0x43   : > { %p40_p3 = por %p39_p10, %p38_p6  ;;  %p2553_p7 = por %p2868_p5, %p38_p6 }
  0x44   : > { %s258_s12 = sand.u32 1, %s2351_s26   ;;  %s1823_s14 = sshll.u32 %s2355_s27, 7 }
  0x45   : > { %s2869_s18 = scalar_select %p2553_p7, 1, 0 }
  0x46   : > { %s1822_s19 = sshll.u32 %s258_s12, 3  ;;  %s2563_s11 = scalar_lea.hbm %s2853_s0, %s1823_s14 }
  0x47   : > { %s262_s22 = scalar_lea.vmem [#allocation2], %s1822_s19  ;;  %p2567_p11 = pnand %p2096_p9, %p40_p3 }
  0x48   : > { %s269_s23 = sshll.u32 %s262_s22, 4  ;;  %s259_s10 = scalar_lea.sflag [#allocation3], %s258_s12  ;;  %s2565_s23 = int_to_ptr.vmem [resolvable:$true] %s269_s23 }
  0x49   : > { %s2255_s15 = scalar_lea.hbm %s2563_s11, 128  ;;  %p2257_p0 = pneg %p2567_p11 }
  0x4a   : > { %p2256_p12 = scmp.ne.s32.totalorder %s2563_s11, %s2255_s15  ;;  %s2260_s14 = scalar_lea.hbm %s2853_s0, 256 }
  0x4b   : > { %p2261_p13 = scmp.lt.u32.totalorder %s2563_s11, %s2853_s0  ;;  %p2262_p6 = scmp.lt.u32.totalorder %s2260_s14, %s2255_s15 }
  0x4c   : > { %p2258_p2 = pnand %p2257_p0, %p2256_p12  ;;  %p2264_p3 = scmp.lt.u32.totalorder %s2255_s15, %s2563_s11 }
  0x4d   : > { %p2263_p10 = por %p2262_p6, %p2261_p13 }
  0x4e   : > { %p2259_p1 = pneg %p2258_p2 }
  0x4f   : > { %p2265_p5 = por %p2264_p3, %p2263_p10 }
  0x51   : > { %p2266_p9 = pnand %p2265_p5, %p2259_p1 }
  0x53   : > { %2269 = shalt.err (!%p2266_p9)
}
  0x54   : > { %s2270_s12 = scalar_lea.vmem %s2565_s23, 128  ;;  %s2363_s22 = smov [#allocation2]  }
  0x55   : > { %p2271_p12 = scmp.ne.s32.totalorder %s2565_s23, %s2270_s12  ;;  %s2275_s16 = sshll.u32 %s2363_s22, 4  ;;  %s2276_s16 = int_to_ptr.vmem [resolvable:$false] %s2275_s16 }
  0x56   : > { %s2277_s19 = scalar_lea.vmem %s2276_s16, 256  ;;  %p2278_p4 = scmp.lt.s32.totalorder %s2565_s23, %s2276_s16 }
  0x57   : > { %p2273_p2 = pnand %p2271_p12, %p2257_p0  ;;  %p2279_p13 = scmp.lt.s32.totalorder %s2277_s19, %s2270_s12 }
  0x59   : > { %p2274_p7 = pneg %p2273_p2  ;;  %p2280_p6 = por %p2279_p13, %p2278_p4 }
  0x5b   : > { %p2281_p10 = pnand %p2280_p6, %p2274_p7 }
  0x5d   : > { %2284 = shalt.err (!%p2281_p10)
}
  0x5e   : > { %2089 = dma.hbm_to_vmem [thread:$0]  (!%p2567_p11), %s2563_s11, 128, %s2565_s23, %s259_s10  }
  0x5f   : > { %278 = sbr.rel (%p2470_p8) target bundleno = 5180 (0x143c), region = 48  ;;  %s2599_s15 = sand.u32 (!%p2470_p8), 1, %s2347_s25  }
  0x60   : > { %s1825_s14 = sshll.u32 (!%p2470_p8), %s2599_s15, 3  ;;  %s281_s20 = scalar_lea.sflag (!%p2470_p8), [#allocation3], %s2599_s15 }
  0x61   : > { %s284_s21 = scalar_lea.vmem (!%p2470_p8), [#allocation2], %s1825_s14  ;;  %p2871_p4 = scmp.ne.s32.totalorder (!%p2470_p8), %s2864_s30, 0 }
  0x66   : > { %2330 = dma.done.wait (%p2871_p4), %s281_s20, 128  }
  0x67   : > { %2332 = vsyncadd (%p2871_p4), %s281_s20, 4294967168  ;;  %p2872_p7 = scmp.eq.s32.totalorder %s2451_s28, 0 }
  0x69   : > { %2334 = dma.done.wait (%p2872_p7), [#allocation6], 512   ;;  %p2873_p8 = pmov %p2872_p7 }
  0x6a   : > { %v2364_v0 = vmov 0.0   ;;  %vm2365_vm0 = vmmov 0   ;;  %v2163_v1 = vld [vmem:[#allocation5] sm:$0xff]   ;;  %v2164_v2 = vld [vmem:[#allocation5 + $0x8] sm:$0xff]   ;;  %v2619_v3 = vld [vmem:[%s284_s21] sm:$0xff]  ;;  %vm349_vm1 = vcmask 261120  }
  0x6b   : > { %2336 = vsyncadd (%p2873_p8), [#allocation6], 4294966784  ;;  %1915 = vmatprep.subr.bf16.mxu0 %v2364_v0  ;;  %1919 = vmatprep.mubr.msk.bf16.mxu0 %vm2365_vm0, %v2364_v0  ;;  %v325_v4 = vpack.c.bf16 %v2619_v3, %v2619_v3  ;;  %v1829_v5 = vld [vmem:[%s2855_s2] ss:$0 sm:$0xff]  ;;  %s2366_s11 = smov 124   ;;  %s2367_s23 = smov 96  }
  0x6c   : > { %1923 = vmatprep.subr.bf16.mxu1 %v2364_v0  ;;  %1925 = vmatprep.mubr.msk.bf16.mxu1 %vm2365_vm0, %v2364_v0  ;;  %s2368_s29 = smov 92   ;;  %vm397_vm2 = vcmask 31744   ;;  %vm444_vm3 = vcmask 64512   ;;  %s2369_s10 = smov 64   ;;  %vm462_vm4 = vcmask 1043456   ;;  %vm624_vm5 = vcmask 1041408  }
  0x6d   : > { %1916 = vmatpush3.bf16.msra.mxu0 %v2163_v1  ;;  %s2370_s12 = smov 60   ;;  %s2371_s22 = smov 120   ;;  %v507_v49 = vld [vmem:[#allocation7] sm:$0x3]  ;;  %v620_v51 = vld [vmem:[#allocation7 + $0x2] sm:$0x3] }
  0x6e   : > { %1917 = vmatprep.subr.bf16.mxu0 %v2364_v0  ;;  %s2372_s16 = smov 88   ;;  %v672_v50 = vsel %vm624_vm5, %v507_v49, 0  ;;  %v626_v52 = vsel %vm624_vm5, %v620_v51, 0  ;;  %s2373_s19 = smov 84  }
  0x6f   : > { %s2374_s20 = smov 116   ;;  %s2375_s21 = smov 56  }
  0x70   : > { %s2376_s30 = smov 52   ;;  %s2377_s9 = smov 112  }
  0x71   : > { %1918 = vmatpush3.bf16.msra.mxu0 %v2164_v2  ;;  %p2874_p0 = scmp.ne.s32.totalorder %s2869_s18, 0 }
  0x72   : > { %1929 = vmatprep.subr.bf16.mxu0 %v2364_v0 }
  0x74   : > { %1920 = vmatmul.mubr.msk.bf16.vlgmr.msra.gmra.mrb[0].mxu0 %vm349_vm1, %v325_v4 }
  0x75   : > { %1931 = vmatprep.mubr.msk.bf16.mxu0 %vm2365_vm0, %v2364_v0 }
 0x147   : > { %v387_v6 = vpop.f32.mrb[0].mxu0 }
 0x148   : > { %v388_v7 = vadd.f32 %v1829_v5, %v387_v6  ;;  %v1921_v8 = vpop.f32.mrb[1].mxu0 }
 0x149   : > { %v390_v9 = vpop.f32.mrb[2].mxu0 }
 0x14a   : > { %v2631_v10 = vpack.c.bf16 %v388_v7, %v388_v7  ;;  %v1922_v11 = vpop.f32.mrb[3].mxu0 }
 0x14c   : > { %508 = vrot.lane.b32.xlu1 %v2631_v10, %s2366_s11  ;;  %395 = vrot.lane.b32.xlu0 %v2631_v10, %s2367_s23  ;;  %s2378_s11 = smov 80   ;;  %s2379_s23 = smov 76  }
 0x150   : > { %510 = vrot.lane.b32.xlu0 %v2631_v10, %s2368_s29  ;;  %s2380_s29 = smov 108  }
 0x1be   : > { %v396_v12 = vpop.permute.xlu0 %395  ;;  %v509_v16 = vpop.permute.xlu1 %508 }
 0x1bf   : > { %v402_v13 = vsel %vm397_vm2, %v396_v12, 0 }
 0x1c0   : > { %1924 = vmatpush3.bf16.xpose.msra.mxu1 %v402_v13 }
 0x1c1   : > { %1935 = vmatprep.subr.bf16.mxu1 %v2364_v0 }
 0x1c2   : > { %v511_v14 = vpop.permute.xlu0 %510 }
 0x1c3   : > { %v516_v15 = vsel %vm397_vm2, %v511_v14, 0 }
 0x1c7   : > { %1926 = vmatmul.mubr.msk.bf16.vlgmr.msra.gmra.mrb[0].mxu1 %vm397_vm2, %v2631_v10 }
 0x1c8   : > { %1936 = vmatpush3.bf16.xpose.msra.mxu1 %v516_v15  ;;  %1937 = vmatprep.mubr.msk.bf16.mxu1 %vm2365_vm0, %v2364_v0 }
 0x1c9   : > { %1947 = vmatprep.subr.bf16.mxu1 %v2364_v0 }
 0x1cf   : > { %1938 = vmatmul.mubr.msk.bf16.vlgmr.msra.gmra.mrb[4].mxu1 %vm397_vm2, %v509_v16 }
 0x1d0   : > { %1949 = vmatprep.mubr.msk.bf16.mxu1 %vm2365_vm0, %v2364_v0  ;;  %1948 = vmatpush3.bf16.msra.mxu1 %v626_v52 }
 0x1d1   : > { %1959 = vmatprep.subr.bf16.mxu1 %v2364_v0 }
 0x29a   : > { %v438_v17 = vpop.f32.mrb[0].mxu1 }
 0x29b   : > { %v1927_v18 = vpop.f32.mrb[1].mxu1  ;;  %v445_v19 = vsel %vm444_vm3, %v438_v17, -inf }
 0x29c   : > { %446 = vmax.xlane.f32.xlu1 %v445_v19  ;;  %v441_v20 = vpop.f32.mrb[2].mxu1 }
 0x29d   : > { %v1928_v21 = vpop.f32.mrb[3].mxu1 }
 0x2a2   : > { %v552_v22 = vpop.f32.mrb[4].mxu1 }
 0x2a3   : > { %v1939_v23 = vpop.f32.mrb[5].mxu1  ;;  %v558_v24 = vsel %vm444_vm3, %v552_v22, -inf }
 0x2a4   : > { %559 = vmax.xlane.f32.xlu0 %v558_v24  ;;  %v555_v25 = vpop.f32.mrb[6].mxu1 }
 0x2a5   : > { %v1940_v26 = vpop.f32.mrb[7].mxu1 }
 0x329   : > { %v447_v27 = vpop.xlane.xlu1 %446 }
 0x32a   : > { %v448_v28 = vsub.f32 %v438_v17, %v447_v27 }
 0x32c   : > { %v449_v29 = vmul.f32 1.442695, %v448_v28 }
 0x32e   : > { %2165 = vpow2.f32 %v449_v29 }
 0x331   : > { %v560_v30 = vpop.xlane.xlu0 %559 }
 0x332   : > { %v561_v31 = vsub.f32 %v552_v22, %v560_v30 }
 0x334   : > { %v562_v32 = vmul.f32 1.442695, %v561_v31 }
 0x336   : > { %2167 = vpow2.f32 %v562_v32 }
 0x338   : > { %v2166_v33 = vpop.eup %2165 }
 0x339   : > { %v451_v34 = vsel %vm444_vm3, %v2166_v33, 0.0 }
 0x33a   : > { %452 = vadd.xlane.f32.xlu0 %v451_v34 }
 0x340   : > { %v2168_v35 = vpop.eup %2167 }
 0x341   : > { %v564_v36 = vsel %vm444_vm3, %v2168_v35, 0.0 }
 0x342   : > { %565 = vadd.xlane.f32.xlu1 %v564_v36 }
 0x350   : > { %457 = vrot.lane.b32.xlu0 %v2631_v10, %s2369_s10  ;;  %s2381_s10 = smov 48  }
 0x353   : > { %570 = vrot.lane.b32.xlu1 %v2631_v10, %s2370_s12  ;;  %s2382_s12 = smov 44  }
 0x354   : > { %714 = vrot.lane.b32.xlu0 %v2631_v10, %s2371_s22  ;;  %s2383_s22 = smov 104  }
 0x357   : > { %716 = vrot.lane.b32.xlu1 %v2631_v10, %s2372_s16  ;;  %s2384_s16 = smov 72  }
 0x3c7   : > { %v453_v37 = vpop.xlane.xlu0 %452 }
 0x3c8   : > { %2169 = vrcp.f32 %v453_v37 }
 0x3cb   : > { %v458_v38 = vpop.permute.xlu0 %457 }
 0x3cc   : > { %v464_v39 = vsel %vm462_vm4, %v458_v38, 0 }
 0x3cd   : > { %1930 = vmatpush3.bf16.msra.mxu0 %v464_v39 }
 0x3ce   : > { %1941 = vmatprep.subr.bf16.mxu0 %v2364_v0 }
 0x3cf   : > { %v566_v40 = vpop.xlane.xlu1 %565  ;;  %v715_v2 = vpop.permute.xlu0 %714 }
 0x3d0   : > { %2171 = vrcp.f32 %v566_v40 }
 0x3d2   : > { %v2170_v41 = vpop.eup %2169 }
 0x3d3   : > { %v455_v42 = vmul.f32 %v2170_v41, %v2166_v33  ;;  %v571_v43 = vpop.permute.xlu1 %570  ;;  %v826_v33 = vld [vmem:[#allocation7 + $0x4] sm:$0x3] }
 0x3d4   : > { %v576_v45 = vsel %vm462_vm4, %v571_v43, 0  ;;  %v831_v34 = vsel %vm624_vm5, %v826_v33, 0 }
 0x3d5   : > { %v456_v44 = vpack.c.bf16 %v455_v42, %v455_v42 }
 0x3d7   : > { %1932 = vmatmul.mubr.msk.bf16.vlgmr.msra.gmra.mrb[4].mxu0 %vm444_vm3, %v456_v44  ;;  %v717_v58 = vpop.permute.xlu1 %716 }
 0x3d8   : > { %1942 = vmatpush3.bf16.msra.mxu0 %v576_v45  ;;  %1943 = vmatprep.mubr.msk.bf16.mxu0 %vm2365_vm0, %v2364_v0  ;;  %v722_v63 = vsel %vm397_vm2, %v717_v58, 0 }
 0x3d9   : > { %1953 = vmatprep.subr.bf16.mxu0 %v2364_v0 }
 0x3da   : > { %v2172_v46 = vpop.eup %2171 }
 0x3db   : > { %v568_v47 = vmul.f32 %v2172_v46, %v2168_v35 }
 0x3dd   : > { %v569_v48 = vpack.c.bf16 %v568_v47, %v568_v47 }
 0x3df   : > { %1944 = vmatmul.mubr.msk.bf16.vlgmr.msra.gmra.mrb[8].mxu0 %vm444_vm3, %v569_v48 }
 0x3e0   : > { %1955 = vmatprep.mubr.msk.bf16.mxu0 %vm2365_vm0, %v2364_v0  ;;  %1954 = vmatpush3.bf16.msra.mxu0 %v672_v50 }
 0x3e1   : > { %1965 = vmatprep.subr.bf16.mxu0 %v2364_v0 }
 0x4aa   : > { %v500_v53 = vpop.f32.mrb[4].mxu0 }
 0x4ab   : > { %v506_v54 = vpack.c.bf16 %v500_v53, %v500_v53  ;;  %v1933_v55 = vpop.f32.mrb[5].mxu0 }
 0x4ac   : > { %v503_v56 = vpop.f32.mrb[6].mxu0 }
 0x4ad   : > { %v1934_v57 = vpop.f32.mrb[7].mxu0  ;;  %1956 = vmatmul.mubr.msk.bf16.vlgmr.msra.gmra.mrb[12].mxu0 %vm397_vm2, %v506_v54 }
 0x4ae   : > { %1967 = vmatprep.mubr.msk.bf16.mxu0 %vm2365_vm0, %v2364_v0 }
 0x4b2   : > { %v612_v59 = vpop.f32.mrb[8].mxu0 }
 0x4b3   : > { %v618_v60 = vpack.c.bf16 %v612_v59, %v612_v59  ;;  %v1945_v61 = vpop.f32.mrb[9].mxu0 }
 0x4b4   : > { %v615_v62 = vpop.f32.mrb[10].mxu0 }
 0x4b5   : > { %v1946_v1 = vpop.f32.mrb[11].mxu0  ;;  %1950 = vmatmul.mubr.msk.bf16.vlgmr.msra.gmra.mrb[8].mxu1 %vm397_vm2, %v618_v60 }
 0x4b6   : > { %1960 = vmatpush3.bf16.xpose.msra.mxu1 %v722_v63  ;;  %1961 = vmatprep.mubr.msk.bf16.mxu1 %vm2365_vm0, %v2364_v0  ;;  %v986_v1 = vld [vmem:[#allocation7 + $0x6] sm:$0x3] }
 0x4b7   : > { %1971 = vmatprep.subr.bf16.mxu1 %v2364_v0 }
 0x4bd   : > { %1962 = vmatmul.mubr.msk.bf16.vlgmr.msra.gmra.mrb[12].mxu1 %vm397_vm2, %v715_v2  ;;  %v991_v2 = vsel %vm624_vm5, %v986_v1, 0 }
 0x4be   : > { %1973 = vmatprep.mubr.msk.bf16.mxu1 %vm2365_vm0, %v2364_v0  ;;  %1972 = vmatpush3.bf16.msra.mxu1 %v831_v34  ;;  %v1146_v34 = vld [vmem:[#allocation7 + $0x8] sm:$0x3] }
 0x4bf   : > { %1983 = vmatprep.subr.bf16.mxu1 %v2364_v0 }
 0x580   : > { %v708_v4 = vpop.f32.mrb[12].mxu0 }
 0x581   : > { %v1957_v5 = vpop.f32.mrb[13].mxu0 }
 0x582   : > { %v711_v6 = vpop.f32.mrb[14].mxu0 }
 0x583   : > { %v1958_v7 = vpop.f32.mrb[15].mxu0 }
 0x588   : > { %v662_v8 = vpop.f32.mrb[8].mxu1 }
 0x589   : > { %v2680_v9 = vadd.f32 %v708_v4, %v662_v8  ;;  %v1951_v11 = vpop.f32.mrb[9].mxu1 }
 0x58a   : > { %v665_v12 = vpop.f32.mrb[10].mxu1 }
 0x58b   : > { %v1952_v13 = vpop.f32.mrb[11].mxu1 }
 0x590   : > { %v758_v14 = vpop.f32.mrb[12].mxu1 }
 0x591   : > { %v1963_v15 = vpop.f32.mrb[13].mxu1  ;;  %v764_v16 = vsel %vm444_vm3, %v758_v14, -inf }
 0x592   : > { %765 = vmax.xlane.f32.xlu1 %v764_v16  ;;  %v761_v17 = vpop.f32.mrb[14].mxu1 }
 0x593   : > { %v1964_v18 = vpop.f32.mrb[15].mxu1 }
 0x5a3   : > { %876 = vrot.lane.b32.xlu1 %v2631_v10, %s2373_s19  ;;  %s2385_s19 = smov 68  }
 0x5a7   : > { %874 = vrot.lane.b32.xlu1 %v2631_v10, %s2374_s20  ;;  %s2386_s20 = smov 100  }
 0x61f   : > { %v766_v19 = vpop.xlane.xlu1 %765 }
 0x620   : > { %v767_v20 = vsub.f32 %v758_v14, %v766_v19 }
 0x622   : > { %v768_v21 = vmul.f32 1.442695, %v767_v20 }
 0x623   : > { %v877_v29 = vpop.permute.xlu1 %876 }
 0x624   : > { %2173 = vpow2.f32 %v768_v21  ;;  %v882_v31 = vsel %vm397_vm2, %v877_v29, 0 }
 0x627   : > { %v875_v32 = vpop.permute.xlu1 %874 }
 0x62e   : > { %v2174_v22 = vpop.eup %2173 }
 0x62f   : > { %v770_v23 = vsel %vm444_vm3, %v2174_v22, 0.0 }
 0x630   : > { %771 = vadd.xlane.f32.xlu0 %v770_v23 }
 0x646   : > { %776 = vrot.lane.b32.xlu0 %v2631_v10, %s2375_s21  ;;  %s2387_s21 = smov 40  }
 0x6bd   : > { %v772_v24 = vpop.xlane.xlu0 %771 }
 0x6be   : > { %2175 = vrcp.f32 %v772_v24 }
 0x6c1   : > { %v777_v25 = vpop.permute.xlu0 %776 }
 0x6c2   : > { %v782_v26 = vsel %vm462_vm4, %v777_v25, 0 }
 0x6c3   : > { %1966 = vmatpush3.bf16.msra.mxu0 %v782_v26 }
 0x6c4   : > { %1977 = vmatprep.subr.bf16.mxu0 %v2364_v0 }
 0x6c8   : > { %v2176_v27 = vpop.eup %2175 }
 0x6c9   : > { %v774_v28 = vmul.f32 %v2176_v27, %v2174_v22 }
 0x6cb   : > { %v775_v30 = vpack.c.bf16 %v774_v28, %v774_v28 }
 0x6cd   : > { %1968 = vmatmul.mubr.msk.bf16.vlgmr.msra.gmra.mrb[16].mxu0 %vm444_vm3, %v775_v30 }
 0x6ce   : > { %1978 = vmatpush3.bf16.xpose.msra.mxu0 %v882_v31  ;;  %1979 = vmatprep.mubr.msk.bf16.mxu0 %vm2365_vm0, %v2364_v0 }
 0x6cf   : > { %1989 = vmatprep.subr.bf16.mxu0 %v2364_v0 }
 0x6d5   : > { %1980 = vmatmul.mubr.msk.bf16.vlgmr.msra.gmra.mrb[20].mxu0 %vm397_vm2, %v875_v32 }
 0x6d6   : > { %1991 = vmatprep.mubr.msk.bf16.mxu0 %vm2365_vm0, %v2364_v0  ;;  %1990 = vmatpush3.bf16.msra.mxu0 %v991_v2  ;;  %v1306_v2 = vld [vmem:[#allocation7 + $0xa] sm:$0x3] }
 0x6d7   : > { %2001 = vmatprep.subr.bf16.mxu0 %v2364_v0 }
 0x7a0   : > { %v818_v35 = vpop.f32.mrb[16].mxu0 }
 0x7a1   : > { %v824_v36 = vpack.c.bf16 %v818_v35, %v818_v35  ;;  %v1969_v37 = vpop.f32.mrb[17].mxu0  ;;  %v1151_v35 = vsel %vm624_vm5, %v1146_v34, 0 }
 0x7a2   : > { %v821_v38 = vpop.f32.mrb[18].mxu0 }
 0x7a3   : > { %v1970_v39 = vpop.f32.mrb[19].mxu0  ;;  %1974 = vmatmul.mubr.msk.bf16.vlgmr.msra.gmra.mrb[16].mxu1 %vm397_vm2, %v824_v36 }
 0x7a4   : > { %1985 = vmatprep.mubr.msk.bf16.mxu1 %vm2365_vm0, %v2364_v0 }
 0x7a8   : > { %v918_v40 = vpop.f32.mrb[20].mxu0 }
 0x7a9   : > { %v1981_v41 = vpop.f32.mrb[21].mxu0  ;;  %v924_v42 = vsel %vm444_vm3, %v918_v40, -inf }
 0x7aa   : > { %925 = vmax.xlane.f32.xlu0 %v924_v42  ;;  %v921_v43 = vpop.f32.mrb[22].mxu0 }
 0x7ab   : > { %v1982_v44 = vpop.f32.mrb[23].mxu0 }
 0x7c0   : > { %936 = vrot.lane.b32.xlu0 %v2631_v10, %s2376_s30  ;;  %s2388_s30 = smov 36  }
 0x7c4   : > { %1034 = vrot.lane.b32.xlu0 %v2631_v10, %s2377_s9  ;;  %s1715_s9 = scalar_lea.sflag [#allocation4], %s2599_s15 }
 0x837   : > { %v926_v45 = vpop.xlane.xlu0 %925 }
 0x838   : > { %v927_v46 = vsub.f32 %v918_v40, %v926_v45 }
 0x83a   : > { %v928_v47 = vmul.f32 1.442695, %v927_v46 }
 0x83b   : > { %v937_v48 = vpop.permute.xlu0 %936 }
 0x83c   : > { %2177 = vpow2.f32 %v928_v47  ;;  %v942_v49 = vsel %vm462_vm4, %v937_v48, 0 }
 0x83d   : > { %1984 = vmatpush3.bf16.msra.mxu1 %v942_v49 }
 0x83e   : > { %1995 = vmatprep.subr.bf16.mxu1 %v2364_v0 }
 0x83f   : > { %v1035_v63 = vpop.permute.xlu0 %1034 }
 0x846   : > { %v2178_v50 = vpop.eup %2177 }
 0x847   : > { %v930_v51 = vsel %vm444_vm3, %v2178_v50, 0.0 }
 0x848   : > { %931 = vadd.xlane.f32.xlu1 %v930_v51 }
 0x859   : > { %1036 = vrot.lane.b32.xlu1 %v2631_v10, %s2378_s11 }
 0x876   : > { %v867_v52 = vpop.f32.mrb[16].mxu1 }
 0x877   : > { %v873_v53 = vadd.f32 %v867_v52, %v2680_v9  ;;  %v1975_v54 = vpop.f32.mrb[17].mxu1 }
 0x878   : > { %v870_v55 = vpop.f32.mrb[18].mxu1 }
 0x879   : > { %v1976_v56 = vpop.f32.mrb[19].mxu1 }
 0x8d5   : > { %v932_v57 = vpop.xlane.xlu1 %931 }
 0x8d6   : > { %2179 = vrcp.f32 %v932_v57 }
 0x8d9   : > { %v1037_v60 = vpop.permute.xlu1 %1036 }
 0x8da   : > { %v1042_v62 = vsel %vm397_vm2, %v1037_v60, 0 }
 0x8e0   : > { %v2180_v58 = vpop.eup %2179 }
 0x8e1   : > { %v934_v59 = vmul.f32 %v2180_v58, %v2178_v50 }
 0x8e3   : > { %v935_v61 = vpack.c.bf16 %v934_v59, %v934_v59 }
 0x8e5   : > { %1986 = vmatmul.mubr.msk.bf16.vlgmr.msra.gmra.mrb[20].mxu1 %vm444_vm3, %v935_v61 }
 0x8e6   : > { %1996 = vmatpush3.bf16.xpose.msra.mxu1 %v1042_v62  ;;  %1997 = vmatprep.mubr.msk.bf16.mxu1 %vm2365_vm0, %v2364_v0 }
 0x8e7   : > { %2007 = vmatprep.subr.bf16.mxu1 %v2364_v0 }
 0x8ed   : > { %1998 = vmatmul.mubr.msk.bf16.vlgmr.msra.gmra.mrb[24].mxu1 %vm397_vm2, %v1035_v63 }
 0x8ee   : > { %2009 = vmatprep.mubr.msk.bf16.mxu1 %vm2365_vm0, %v2364_v0  ;;  %2008 = vmatpush3.bf16.msra.mxu1 %v1151_v35  ;;  %v1466_v35 = vld [vmem:[#allocation7 + $0xc] sm:$0x3] }
 0x8ef   : > { %2019 = vmatprep.subr.bf16.mxu1 %v2364_v0 }
 0x9b8   : > { %v978_v4 = vpop.f32.mrb[20].mxu1 }
 0x9b9   : > { %v984_v5 = vpack.c.bf16 %v978_v4, %v978_v4  ;;  %v1987_v6 = vpop.f32.mrb[21].mxu1  ;;  %v1311_v4 = vsel %vm624_vm5, %v1306_v2, 0 }
 0x9ba   : > { %v981_v7 = vpop.f32.mrb[22].mxu1 }
 0x9bb   : > { %v1988_v8 = vpop.f32.mrb[23].mxu1  ;;  %1992 = vmatmul.mubr.msk.bf16.vlgmr.msra.gmra.mrb[24].mxu0 %vm397_vm2, %v984_v5 }
 0x9bc   : > { %2003 = vmatprep.mubr.msk.bf16.mxu0 %vm2365_vm0, %v2364_v0 }
 0x9c0   : > { %v1078_v9 = vpop.f32.mrb[24].mxu1 }
 0x9c1   : > { %v1999_v11 = vpop.f32.mrb[25].mxu1  ;;  %v1084_v12 = vsel %vm444_vm3, %v1078_v9, -inf }
 0x9c2   : > { %1085 = vmax.xlane.f32.xlu1 %v1084_v12  ;;  %v1081_v13 = vpop.f32.mrb[26].mxu1 }
 0x9c3   : > { %v2000_v14 = vpop.f32.mrb[27].mxu1 }
 0x9d3   : > { %1196 = vrot.lane.b32.xlu1 %v2631_v10, %s2379_s23 }
 0x9d7   : > { %1194 = vrot.lane.b32.xlu1 %v2631_v10, %s2380_s29 }
 0xa4f   : > { %v1086_v15 = vpop.xlane.xlu1 %1085 }
 0xa50   : > { %v1087_v16 = vsub.f32 %v1078_v9, %v1086_v15 }
 0xa52   : > { %v1088_v17 = vmul.f32 1.442695, %v1087_v16 }
 0xa53   : > { %v1197_v30 = vpop.permute.xlu1 %1196 }
 0xa54   : > { %2181 = vpow2.f32 %v1088_v17  ;;  %v1202_v32 = vsel %vm397_vm2, %v1197_v30, 0 }
 0xa57   : > { %v1195_v33 = vpop.permute.xlu1 %1194 }
 0xa5e   : > { %v2182_v18 = vpop.eup %2181 }
 0xa5f   : > { %v1090_v19 = vsel %vm444_vm3, %v2182_v18, 0.0 }
 0xa60   : > { %1091 = vadd.xlane.f32.xlu0 %v1090_v19 }
 0xa76   : > { %1096 = vrot.lane.b32.xlu0 %v2631_v10, %s2381_s10 }
 0xa8e   : > { %v1027_v20 = vpop.f32.mrb[24].mxu0 }
 0xa8f   : > { %v1033_v21 = vadd.f32 %v1027_v20, %v873_v53  ;;  %v1993_v22 = vpop.f32.mrb[25].mxu0 }
 0xa90   : > { %v1030_v23 = vpop.f32.mrb[26].mxu0 }
 0xa91   : > { %v1994_v24 = vpop.f32.mrb[27].mxu0 }
 0xaed   : > { %v1092_v25 = vpop.xlane.xlu0 %1091 }
 0xaee   : > { %2183 = vrcp.f32 %v1092_v25 }
 0xaf1   : > { %v1097_v26 = vpop.permute.xlu0 %1096 }
 0xaf2   : > { %v1102_v27 = vsel %vm462_vm4, %v1097_v26, 0 }
 0xaf3   : > { %2002 = vmatpush3.bf16.msra.mxu0 %v1102_v27 }
 0xaf4   : > { %2013 = vmatprep.subr.bf16.mxu0 %v2364_v0 }
 0xaf8   : > { %v2184_v28 = vpop.eup %2183 }
 0xaf9   : > { %v1094_v29 = vmul.f32 %v2184_v28, %v2182_v18 }
 0xafb   : > { %v1095_v31 = vpack.c.bf16 %v1094_v29, %v1094_v29 }
 0xafd   : > { %2004 = vmatmul.mubr.msk.bf16.vlgmr.msra.gmra.mrb[28].mxu0 %vm444_vm3, %v1095_v31 }
 0xafe   : > { %2014 = vmatpush3.bf16.xpose.msra.mxu0 %v1202_v32  ;;  %2015 = vmatprep.mubr.msk.bf16.mxu0 %vm2365_vm0, %v2364_v0 }
 0xaff   : > { %2025 = vmatprep.subr.bf16.mxu0 %v2364_v0 }
 0xb05   : > { %2016 = vmatmul.mubr.msk.bf16.vlgmr.msra.gmra.mrb[32].mxu0 %vm397_vm2, %v1195_v33 }
 0xb06   : > { %2027 = vmatprep.mubr.msk.bf16.mxu0 %vm2365_vm0, %v2364_v0  ;;  %2026 = vmatpush3.bf16.msra.mxu0 %v1311_v4 }
 0xb07   : > { %2037 = vmatprep.subr.bf16.mxu0 %v2364_v0 }
 0xbd0   : > { %v1138_v36 = vpop.f32.mrb[28].mxu0 }
 0xbd1   : > { %v1144_v37 = vpack.c.bf16 %v1138_v36, %v1138_v36  ;;  %v2005_v38 = vpop.f32.mrb[29].mxu0  ;;  %v1471_v36 = vsel %vm624_vm5, %v1466_v35, 0 }
 0xbd2   : > { %v1141_v39 = vpop.f32.mrb[30].mxu0 }
 0xbd3   : > { %v2006_v40 = vpop.f32.mrb[31].mxu0  ;;  %2010 = vmatmul.mubr.msk.bf16.vlgmr.msra.gmra.mrb[28].mxu1 %vm397_vm2, %v1144_v37 }
 0xbd4   : > { %2021 = vmatprep.mubr.msk.bf16.mxu1 %vm2365_vm0, %v2364_v0 }
 0xbd8   : > { %v1238_v41 = vpop.f32.mrb[32].mxu0 }
 0xbd9   : > { %v2017_v42 = vpop.f32.mrb[33].mxu0  ;;  %v1244_v43 = vsel %vm444_vm3, %v1238_v41, -inf }
 0xbda   : > { %1245 = vmax.xlane.f32.xlu0 %v1244_v43  ;;  %v1241_v44 = vpop.f32.mrb[34].mxu0 }
 0xbdb   : > { %v2018_v45 = vpop.f32.mrb[35].mxu0 }
 0xbf0   : > { %1256 = vrot.lane.b32.xlu0 %v2631_v10, %s2382_s12 }
 0xbf4   : > { %1354 = vrot.lane.b32.xlu0 %v2631_v10, %s2383_s22  ;;  %s1861_s22 = sshll.u32 %s2451_s28, 7  ;;  %s2389_s28 = smov [#allocation8]  }
 0xc67   : > { %v1246_v46 = vpop.xlane.xlu0 %1245 }
 0xc68   : > { %v1247_v47 = vsub.f32 %v1238_v41, %v1246_v46 }
 0xc6a   : > { %v1248_v48 = vmul.f32 1.442695, %v1247_v47 }
 0xc6b   : > { %v1257_v49 = vpop.permute.xlu0 %1256 }
 0xc6c   : > { %2185 = vpow2.f32 %v1248_v48  ;;  %v1262_v50 = vsel %vm462_vm4, %v1257_v49, 0 }
 0xc6d   : > { %2020 = vmatpush3.bf16.msra.mxu1 %v1262_v50 }
 0xc6e   : > { %2031 = vmatprep.subr.bf16.mxu1 %v2364_v0 }
 0xc6f   : > { %v1355_v1 = vpop.permute.xlu0 %1354 }
 0xc76   : > { %v2186_v51 = vpop.eup %2185 }
 0xc77   : > { %v1250_v52 = vsel %vm444_vm3, %v2186_v51, 0.0 }
 0xc78   : > { %1251 = vadd.xlane.f32.xlu1 %v1250_v52 }
 0xc89   : > { %1356 = vrot.lane.b32.xlu1 %v2631_v10, %s2384_s16  ;;  %s322_s16 = scalar_lea.vmem [#allocation8], %s1825_s14  ;;  %s2289_s14 = sshll.u32 %s2389_s28, 4  ;;  %s2290_s14 = int_to_ptr.vmem [resolvable:$false] %s2289_s14 }
 0xc8a   : > { %s2291_s23 = scalar_lea.vmem %s2290_s14, 256 }
 0xca6   : > { %v1187_v53 = vpop.f32.mrb[28].mxu1 }
 0xca7   : > { %v1193_v54 = vadd.f32 %v1187_v53, %v1033_v21  ;;  %v2011_v55 = vpop.f32.mrb[29].mxu1  ;;  %v1626_v53 = vld [vmem:[#allocation7 + $0xe] sm:$0x3] }
 0xca8   : > { %v1190_v56 = vpop.f32.mrb[30].mxu1 }
 0xca9   : > { %v2012_v57 = vpop.f32.mrb[31].mxu1 }
 0xd05   : > { %v1252_v58 = vpop.xlane.xlu1 %1251 }
 0xd06   : > { %2187 = vrcp.f32 %v1252_v58 }
 0xd09   : > { %v1357_v61 = vpop.permute.xlu1 %1356 }
 0xd0a   : > { %v1362_v63 = vsel %vm397_vm2, %v1357_v61, 0 }
 0xd10   : > { %v2188_v59 = vpop.eup %2187 }
 0xd11   : > { %v1254_v60 = vmul.f32 %v2188_v59, %v2186_v51 }
 0xd13   : > { %v1255_v62 = vpack.c.bf16 %v1254_v60, %v1254_v60 }
 0xd15   : > { %2022 = vmatmul.mubr.msk.bf16.vlgmr.msra.gmra.mrb[32].mxu1 %vm444_vm3, %v1255_v62 }
 0xd16   : > { %2032 = vmatpush3.bf16.xpose.msra.mxu1 %v1362_v63  ;;  %2033 = vmatprep.mubr.msk.bf16.mxu1 %vm2365_vm0, %v2364_v0 }
 0xd17   : > { %2043 = vmatprep.subr.bf16.mxu1 %v2364_v0 }
 0xd1d   : > { %2034 = vmatmul.mubr.msk.bf16.vlgmr.msra.gmra.mrb[36].mxu1 %vm397_vm2, %v1355_v1 }
 0xd1e   : > { %2045 = vmatprep.mubr.msk.bf16.mxu1 %vm2365_vm0, %v2364_v0  ;;  %2044 = vmatpush3.bf16.msra.mxu1 %v1471_v36 }
 0xd1f   : > { %2055 = vmatprep.subr.bf16.mxu1 %v2364_v0 }
 0xde8   : > { %v1298_v5 = vpop.f32.mrb[32].mxu1 }
 0xde9   : > { %v1304_v6 = vpack.c.bf16 %v1298_v5, %v1298_v5  ;;  %v2023_v7 = vpop.f32.mrb[33].mxu1 }
 0xdea   : > { %v1301_v8 = vpop.f32.mrb[34].mxu1 }
 0xdeb   : > { %v2024_v9 = vpop.f32.mrb[35].mxu1  ;;  %2028 = vmatmul.mubr.msk.bf16.vlgmr.msra.gmra.mrb[36].mxu0 %vm397_vm2, %v1304_v6 }
 0xdec   : > { %2039 = vmatprep.mubr.msk.bf16.mxu0 %vm2365_vm0, %v2364_v0 }
 0xdf0   : > { %v1398_v11 = vpop.f32.mrb[36].mxu1 }
 0xdf1   : > { %v2035_v12 = vpop.f32.mrb[37].mxu1  ;;  %v1404_v13 = vsel %vm444_vm3, %v1398_v11, -inf }
 0xdf2   : > { %1405 = vmax.xlane.f32.xlu1 %v1404_v13  ;;  %v1401_v14 = vpop.f32.mrb[38].mxu1 }
 0xdf3   : > { %v2036_v15 = vpop.f32.mrb[39].mxu1 }
 0xe03   : > { %1516 = vrot.lane.b32.xlu1 %v2631_v10, %s2385_s19  ;;  %s1728_s19 = sshll.u32 %s322_s16, 4  ;;  %s2810_s19 = int_to_ptr.vmem [resolvable:$true] %s1728_s19 }
 0xe04   : > { %s2285_s11 = scalar_lea.vmem %s2810_s19, 128  ;;  %p2292_p5 = scmp.lt.s32.totalorder %s2810_s19, %s2290_s14 }
 0xe05   : > { %p2286_p11 = scmp.ne.s32.totalorder %s2810_s19, %s2285_s11  ;;  %p2293_p9 = scmp.lt.s32.totalorder %s2291_s23, %s2285_s11 }
 0xe07   : > { %1514 = vrot.lane.b32.xlu1 %v2631_v10, %s2386_s20  ;;  %p2287_p1 = pnand %p2286_p11, %p2874_p0  ;;  %p2294_p12 = por %p2293_p9, %p2292_p5 }
 0xe09   : > { %p2288_p3 = pneg %p2287_p1 }
 0xe0b   : > { %p2295_p2 = pnand %p2294_p12, %p2288_p3 }
 0xe7f   : > { %v1406_v16 = vpop.xlane.xlu1 %1405 }
 0xe80   : > { %v1407_v17 = vsub.f32 %v1398_v11, %v1406_v16  ;;  %v1857_v11 = vld [vmem:[%s2857_s4] ss:$0 sm:$0xff] }
 0xe82   : > { %v1408_v18 = vmul.f32 1.442695, %v1407_v17 }
 0xe83   : > { %v1517_v31 = vpop.permute.xlu1 %1516 }
 0xe84   : > { %2189 = vpow2.f32 %v1408_v18  ;;  %v1522_v33 = vsel %vm397_vm2, %v1517_v31, 0 }
 0xe87   : > { %v1515_v34 = vpop.permute.xlu1 %1514 }
 0xe8e   : > { %v2190_v19 = vpop.eup %2189 }
 0xe8f   : > { %v1410_v20 = vsel %vm444_vm3, %v2190_v19, 0.0 }
 0xe90   : > { %1411 = vadd.xlane.f32.xlu0 %v1410_v20 }
 0xea6   : > { %1416 = vrot.lane.b32.xlu0 %v2631_v10, %s2387_s21 }
 0xebe   : > { %v1347_v21 = vpop.f32.mrb[36].mxu0 }
 0xebf   : > { %v1353_v22 = vadd.f32 %v1347_v21, %v1193_v54  ;;  %v2029_v23 = vpop.f32.mrb[37].mxu0  ;;  %v1631_v54 = vsel %vm624_vm5, %v1626_v53, 0 }
 0xec0   : > { %v1350_v24 = vpop.f32.mrb[38].mxu0 }
 0xec1   : > { %v2030_v25 = vpop.f32.mrb[39].mxu0  ;;  %v1858_v24 = vld [vmem:[%s2858_s5] ss:$0 sm:$0xff] }
 0xf1d   : > { %v1412_v26 = vpop.xlane.xlu0 %1411 }
 0xf1e   : > { %2191 = vrcp.f32 %v1412_v26  ;;  %v1859_v26 = vld [vmem:[%s2859_s6] ss:$0 sm:$0xff] }
 0xf21   : > { %v1417_v27 = vpop.permute.xlu0 %1416 }
 0xf22   : > { %v1422_v28 = vsel %vm462_vm4, %v1417_v27, 0 }
 0xf23   : > { %2038 = vmatpush3.bf16.msra.mxu0 %v1422_v28 }
 0xf24   : > { %2049 = vmatprep.subr.bf16.mxu0 %v2364_v0 }
 0xf28   : > { %v2192_v29 = vpop.eup %2191 }
 0xf29   : > { %v1414_v30 = vmul.f32 %v2192_v29, %v2190_v19 }
 0xf2b   : > { %v1415_v32 = vpack.c.bf16 %v1414_v30, %v1414_v30 }
 0xf2d   : > { %2040 = vmatmul.mubr.msk.bf16.vlgmr.msra.gmra.mrb[40].mxu0 %vm444_vm3, %v1415_v32 }
 0xf2e   : > { %2050 = vmatpush3.bf16.xpose.msra.mxu0 %v1522_v33  ;;  %2051 = vmatprep.mubr.msk.bf16.mxu0 %vm2365_vm0, %v2364_v0 }
 0xf2f   : > { %2061 = vmatprep.subr.bf16.mxu0 %v2364_v0 }
 0xf35   : > { %2052 = vmatmul.mubr.msk.bf16.vlgmr.msra.gmra.mrb[44].mxu0 %vm397_vm2, %v1515_v34 }
 0xf36   : > { %2063 = vmatprep.mubr.msk.bf16.mxu0 %vm2365_vm0, %v2364_v0  ;;  %2062 = vmatpush3.bf16.msra.mxu0 %v1631_v54 }
0x1000   : > { %v1458_v37 = vpop.f32.mrb[40].mxu0 }
0x1001   : > { %v1464_v38 = vpack.c.bf16 %v1458_v37, %v1458_v37  ;;  %v2041_v39 = vpop.f32.mrb[41].mxu0 }
0x1002   : > { %v1461_v40 = vpop.f32.mrb[42].mxu0 }
0x1003   : > { %v2042_v41 = vpop.f32.mrb[43].mxu0  ;;  %2046 = vmatmul.mubr.msk.bf16.vlgmr.msra.gmra.mrb[40].mxu1 %vm397_vm2, %v1464_v38 }
0x1004   : > { %2057 = vmatprep.mubr.msk.bf16.mxu1 %vm2365_vm0, %v2364_v0 }
0x1008   : > { %v1558_v42 = vpop.f32.mrb[44].mxu0 }
0x1009   : > { %v2053_v43 = vpop.f32.mrb[45].mxu0  ;;  %v1564_v44 = vsel %vm444_vm3, %v1558_v42, -inf }
0x100a   : > { %1565 = vmax.xlane.f32.xlu0 %v1564_v44  ;;  %v1561_v45 = vpop.f32.mrb[46].mxu0 }
0x100b   : > { %v2054_v46 = vpop.f32.mrb[47].mxu0 }
0x1020   : > { %1576 = vrot.lane.b32.xlu0 %v2631_v10, %s2388_s30  ;;  %s2808_s30 = scalar_lea.hbm %s2860_s7, %s1861_s22 }
0x1097   : > { %v1566_v47 = vpop.xlane.xlu0 %1565 }
0x1098   : > { %v1567_v48 = vsub.f32 %v1558_v42, %v1566_v47 }
0x109a   : > { %v1568_v49 = vmul.f32 1.442695, %v1567_v48 }
0x109b   : > { %v1577_v50 = vpop.permute.xlu0 %1576 }
0x109c   : > { %2193 = vpow2.f32 %v1568_v49  ;;  %v1582_v51 = vsel %vm462_vm4, %v1577_v50, 0 }
0x109d   : > { %2056 = vmatpush3.bf16.msra.mxu1 %v1582_v51 }
0x10a6   : > { %v2194_v52 = vpop.eup %2193 }
0x10a7   : > { %v1570_v0 = vsel %vm444_vm3, %v2194_v52, 0.0 }
0x10a8   : > { %1571 = vadd.xlane.f32.xlu1 %v1570_v0 }
0x10d6   : > { %v1507_v55 = vpop.f32.mrb[40].mxu1 }
0x10d7   : > { %v1513_v56 = vadd.f32 %v1507_v55, %v1353_v22  ;;  %v2047_v57 = vpop.f32.mrb[41].mxu1 }
0x10d8   : > { %v1510_v10 = vpop.f32.mrb[42].mxu1 }
0x10d9   : > { %v2048_v58 = vpop.f32.mrb[43].mxu1 }
0x1135   : > { %v1572_v59 = vpop.xlane.xlu1 %1571 }
0x1136   : > { %2195 = vrcp.f32 %v1572_v59 }
0x1140   : > { %v2196_v60 = vpop.eup %2195 }
0x1141   : > { %v1574_v61 = vmul.f32 %v2196_v60, %v2194_v52 }
0x1143   : > { %v1575_v62 = vpack.c.bf16 %v1574_v61, %v1574_v61 }
0x1145   : > { %2058 = vmatmul.mubr.msk.bf16.vlgmr.msra.gmra.mrb[44].mxu1 %vm444_vm3, %v1575_v62 }
0x1218   : > { %v1618_v63 = vpop.f32.mrb[44].mxu1 }
0x1219   : > { %v1624_v1 = vpack.c.bf16 %v1618_v63, %v1618_v63  ;;  %v2059_v2 = vpop.f32.mrb[45].mxu1 }
0x121a   : > { %v1621_v4 = vpop.f32.mrb[46].mxu1 }
0x121b   : > { %v2060_v5 = vpop.f32.mrb[47].mxu1  ;;  %2064 = vmatmul.mubr.msk.bf16.vlgmr.msra.gmra.mrb[48].mxu0 %vm397_vm2, %v1624_v1 }
0x12ee   : > { %v1667_v6 = vpop.f32.mrb[48].mxu0 }
0x12ef   : > { %v1673_v7 = vadd.f32 %v1667_v6, %v1513_v56  ;;  %v2065_v8 = vpop.f32.mrb[49].mxu0 }
0x12f0   : > { %v1670_v9 = vpop.f32.mrb[50].mxu0 }
0x12f1   : > { %v1674_v12 = vadd.f32 %v1673_v7, %v2619_v3  ;;  %v2066_v13 = vpop.f32.mrb[51].mxu0 }
0x12f3   : > { %v1682_v14 = vadd.f32 %v1857_v11, %v1674_v12 }
0x12f5   : > { %v1683_v15 = vsel %vm349_vm1, %v1682_v14, 0.0 }
0x12f6   : > { %1684 = vadd.xlane.f32.xlu1 %v1683_v15 }
0x1383   : > { %v1685_v16 = vpop.xlane.xlu1 %1684 }
0x1384   : > { %v1687_v17 = vmul.f32 0.03125, %v1685_v16 }
0x1386   : > { %v1688_v18 = vsub.f32 %v1682_v14, %v1687_v17 }
0x1388   : > { %v1689_v19 = vmul.f32 %v1688_v18, %v1688_v18 }
0x138a   : > { %v1690_v20 = vsel %vm349_vm1, %v1689_v19, 0.0 }
0x138b   : > { %1691 = vadd.xlane.f32.xlu1 %v1690_v20 }
0x1418   : > { %v1692_v21 = vpop.xlane.xlu1 %1691 }
0x1419   : > { %v1693_v22 = vmul.f32 0.03125, %v1692_v21 }
0x141b   : > { %v1694_v23 = vadd.f32 1e-05, %v1693_v22 }
0x141d   : > { %2197 = vrsqrt.f32 %v1694_v23 }
0x1427   : > { %v2198_v3 = vpop.eup %2197 }
0x1428   : > { %v1696_v25 = vmul.f32 %v2198_v3, %v1688_v18 }
0x142a   : > { %v1704_v27 = vmul.f32 %v1858_v24, %v1696_v25 }
0x142c   : > { %v1712_v28 = vadd.f32 %v1859_v26, %v1704_v27 }
0x142e   : > { %1713 = vst.msk [vmem:[%s322_s16] sm:$0xff] %vm349_vm1, %v1712_v28 }
0x142f   : > { %2298 = shalt.err (!%p2295_p2)
}
0x1430   : > { %s2299_s15 = scalar_lea.hbm %s2808_s30, 128  ;;  %s2303_s12 = scalar_lea.hbm %s2860_s7, 256 }
0x1431   : > { %p2300_p13 = scmp.ne.s32.totalorder %s2808_s30, %s2299_s15  ;;  %p2304_p4 = scmp.lt.u32.totalorder %s2808_s30, %s2860_s7 }
0x1432   : > { %p2305_p7 = scmp.lt.u32.totalorder %s2303_s12, %s2299_s15  ;;  %p2307_p11 = scmp.lt.u32.totalorder %s2299_s15, %s2808_s30 }
0x1433   : > { %p2301_p6 = pnand %p2300_p13, %p2874_p0 }
0x1434   : > { %p2306_p8 = por %p2305_p7, %p2304_p4 }
0x1435   : > { %p2302_p10 = pneg %p2301_p6 }
0x1436   : > { %p2308_p1 = por %p2307_p11, %p2306_p8 }
0x1438   : > { %p2309_p3 = pnand %p2308_p1, %p2302_p10 }
0x143a   : > { %2312 = shalt.err (!%p2309_p3)
}
0x143b   : > { %2077 = dma.vmem_to_hbm [thread:$0]  (%p2874_p0), %s2810_s19, 128, %s2808_s30, %s1715_s9  }
0x143c PF: > { %s1740_s20 = sand.u32 1, %s2343_s24   ;;  %p2875_p5 = scmp.ne.s32.totalorder %s2865_s8, 0 }
0x143d   : > { %p2876_p9 = scmp.ge.s32.totalorder %s2355_s27, 2  ;;  %s1741_s21 = scalar_lea.sflag [#allocation4], %s1740_s20 }
0x143f   : > { %p2091_p12 = pnand %p2876_p9, %p2875_p5 }
0x1441   : > { %2338 = dma.done.wait (!%p2091_p12), %s1741_s21, 128  }
0x1442   : > { %2340 = vsyncadd (!%p2091_p12), %s1741_s21, 4294967168  ;;  %p21_p2 = scmp.ge.s32.totalorder %s2540_s13, 4   ;;  %s2877_s24 = smov %s2347_s25 }
0x1443   : > { %s2878_s25 = smov %s2351_s26  ;;  %s2879_s26 = smov %s2549_s17 }
0x1444   : > { %s2880_s27 = smov %s2540_s13  ;;  %23 = sbr.rel (!%p21_p2) target bundleno = 6 (0x6), region = 108 }
0x144b   :  { %1746 = vsyncpa [#allocation3], 1 }
0x144c   :  { %1748 = vsyncpa [#allocation3 + $0x1], 1 }
0x144d   :  { %1749 = vsyncpa [#allocation6], 1 }
0x144e   :  { %1750 = vsyncpa [#allocation4], 1 }
0x144f   :  { %1752 = vsyncpa [#allocation4 + $0x1], 1 }

</bundles_post_ra>
